<compile_context>
chip_gen: v7x
topology: tpu7x:2x2x1
jax: 0.10.0
libtpu: 0.0.40
codegen_flags: <defaults>
</compile_context>

<pallas_src>
import functools

import jax
import jax.numpy as jnp
from jax import lax
from jax.experimental import pallas as pl
from jax.experimental.pallas import tpu as pltpu

_LANE = 128
_ROW_TILE = 512          # feedback: 512-1024 row tiles; 512 keeps every
                         # generation's default scoped-VMEM limit happy.


def _round_up(x, m):
    return ((x + m - 1) // m) * m


def _pick_tile(dim, cap=_ROW_TILE):
    """Largest multiple of 128 that divides `dim` and is <= cap."""
    cap = min(cap, dim)
    for t in range(cap - cap % _LANE, 0, -_LANE):
        if dim % t == 0:
            return t
    return dim


def _vmem_budget_bytes():
    # Stay below the tightest default *scoped* VMEM limit across generations
    # (v5e 16 MiB, v6e/v7x 32 MiB) so no vmem_limit_bytes override is needed,
    # and leave headroom against v7x's 64 MiB physical VMEM.
    try:
        cap = pltpu.get_tpu_info().vmem_capacity_bytes
    except Exception:
        cap = 128 << 20
    return min(12 << 20, cap // 4)


def _params(dims):
    # "parallel" on the output-row axis lets v7x shard the grid across its two
    # TensorCores; it is harmless on single-core v5e/v6e.
    return pltpu.CompilerParams(dimension_semantics=dims)


# ----------------------------------------------------------------------------
# Kernel 1: degree pass
#   norm = rsqrt(clamp(in_degree, 1))   and   inv_deg = 1 / clamp(in_degree, 1)
# The f32 inv_deg output block (constant index across the reduction axis) is
# used directly as the accumulator; A stays bf16 on the MXU (exact for 0/1).
# ----------------------------------------------------------------------------
def _norm_kernel(a_ref, norm_ref, inv_ref):
    j = pl.program_id(1)

    @pl.when(j == 0)
    def _():
        norm_ref[...] = jnp.zeros_like(norm_ref)
        inv_ref[...] = jnp.zeros_like(inv_ref)

    # in_degree[v] = sum_u A[u, v]: column sum expressed as a bf16 MXU mat-vec
    # (contract axis 0) with exact f32 accumulation; no f32 upcast of A.
    ones = jnp.ones((a_ref.shape[0], 1), dtype=a_ref.dtype)
    inv_ref[...] += lax.dot_general(
        a_ref[...], ones,
        dimension_numbers=(((0,), (0,)), ((), ())),
        preferred_element_type=jnp.float32)

    @pl.when(j == pl.num_programs(1) - 1)
    def _():
        deg = jnp.maximum(inv_ref[...], 1.0)      # clamp(min=1)
        norm_ref[...] = lax.rsqrt(deg)            # deg ** -0.5
        inv_ref[...] = 1.0 / deg                  # norm**2, for hops 1..k-1


def _graph_norm(a):
    n = a.shape[0]
    tm = _pick_tile(n)
    tk = _pick_tile(n)
    return pl.pallas_call(
        _norm_kernel,
        out_shape=(jax.ShapeDtypeStruct((n, 1), jnp.float32),
                   jax.ShapeDtypeStruct((n, 1), jnp.float32)),
        grid=(n // tm, n // tk),
        in_specs=[pl.BlockSpec((tk, tm), lambda i, j: (j, i))],
        out_specs=(pl.BlockSpec((tm, 1), lambda i, j: (i, 0)),
                   pl.BlockSpec((tm, 1), lambda i, j: (i, 0))),
        compiler_params=_params(("parallel", "arbitrary")),
    )(a)


# ----------------------------------------------------------------------------
# Kernel 2: linear  z = (x @ W^T) [* row_scale]   (PyTorch weight [D_out,D_in])
# Accumulates directly into the revisited f32 output block (no VMEM scratch);
# the optional per-row scale (the first `norm * h` of the recurrence) is
# applied once in the finalize.
# ----------------------------------------------------------------------------
def _linear_kernel(x_ref, w_ref, o_ref):
    kk = pl.program_id(2)

    @pl.when(kk == 0)
    def _():
        o_ref[...] = jnp.zeros_like(o_ref)

    o_ref[...] += lax.dot_general(
        x_ref[...], w_ref[...],
        dimension_numbers=(((1,), (1,)), ((), ())),   # x @ w.T, no transpose copy
        preferred_element_type=jnp.float32)


def _linear_scaled_kernel(x_ref, w_ref, s_ref, o_ref):
    kk = pl.program_id(2)

    @pl.when(kk == 0)
    def _():
        o_ref[...] = jnp.zeros_like(o_ref)

    o_ref[...] += lax.dot_general(
        x_ref[...], w_ref[...],
        dimension_numbers=(((1,), (1,)), ((), ())),
        preferred_element_type=jnp.float32)

    @pl.when(kk == pl.num_programs(2) - 1)
    def _():
        o_ref[...] *= s_ref[...]                      # fused g0 = norm * (X W^T)


def _linear(x, w, row_scale=None):
    n, d_in = x.shape
    d_out = w.shape[0]
    tm, tn, tk = _pick_tile(n), _pick_tile(d_out), _pick_tile(d_in)
    in_specs = [
        pl.BlockSpec((tm, tk), lambda i, j, kk: (i, kk)),
        pl.BlockSpec((tn, tk), lambda i, j, kk: (j, kk)),
    ]
    args = (x, w)
    kernel = _linear_kernel
    if row_scale is not None:
        kernel = _linear_scaled_kernel
        # Block index depends only on the output-row tile, so this tiny block
        # is not re-copied across the j / kk sweeps.
        in_specs.append(pl.BlockSpec((tm, 1), lambda i, j, kk: (i, 0)))
        args = (x, w, row_scale)
    return pl.pallas_call(
        kernel,
        out_shape=jax.ShapeDtypeStruct((n, d_out), jnp.float32),
        grid=(n // tm, d_out // tn, d_in // tk),
        in_specs=in_specs,
        out_specs=pl.BlockSpec((tm, tn), lambda i, j, kk: (i, j)),
        compiler_params=_params(("parallel", "parallel", "arbitrary")),
    )(*args)


# ----------------------------------------------------------------------------
# Kernel 3: elementwise row scale  y = x * s   (only for the d_out > d_in
# branch, where the initial `norm * h` cannot be fused into the linear).
# ----------------------------------------------------------------------------
def _scale_kernel(x_ref, s_ref, o_ref):
    o_ref[...] = x_ref[...] * s_ref[...]


def _scale_rows(x, s):
    n, d = x.shape
    tm, td = _pick_tile(n), _pick_tile(d)
    return pl.pallas_call(
        _scale_kernel,
        out_shape=jax.ShapeDtypeStruct((n, d), jnp.float32),
        grid=(n // tm, d // td),
        in_specs=[pl.BlockSpec((tm, td), lambda i, j: (i, j)),
                  pl.BlockSpec((tm, 1), lambda i, j: (i, 0))],
        out_specs=pl.BlockSpec((tm, td), lambda i, j: (i, j)),
        compiler_params=_params(("parallel", "parallel")),
    )(x, s)


# ----------------------------------------------------------------------------
# Kernel 4: one propagation hop  out = row_scale * (A^T @ g)
# row_scale is 1/deg for intermediate hops and norm for the last hop; the
# input-side norm scaling has been folded away (see header).  Accumulates
# directly into the revisited f32 output block.
# ----------------------------------------------------------------------------
def _hop_kernel(a_ref, h_ref, s_ref, o_ref, *, resident_h):
    j = pl.program_id(1)

    @pl.when(j == 0)
    def _():
        o_ref[...] = jnp.zeros_like(o_ref)

    tk = a_ref.shape[0]
    if resident_h:
        # h is VMEM-resident for the whole kernel (DMA'd once); slice the
        # contracted row block dynamically.
        hj = h_ref[pl.ds(pl.multiple_of(j * tk, tk), tk), :]
    else:
        hj = h_ref[...]

    # dtype note: A is stored/streamed as bf16 (exact for 0/1) to halve the
    # dominant HBM stream; h stays f32 so the result matches the f32 reference
    # at 1e-4 (casting h to bf16 would not).  The f32 upcast of the A tile is
    # VPU work fully hidden under the A-tile DMA in this HBM-bound kernel.
    # out[i, :] += sum_j A[j, i] * g[j, :]  ==  row tile of A^T @ g, expressed
    # by contracting A's axis 0 (no transposed copy of A anywhere).
    o_ref[...] += lax.dot_general(
        a_ref[...].astype(jnp.float32), hj,
        dimension_numbers=(((0,), (0,)), ((), ())),
        preferred_element_type=jnp.float32)

    @pl.when(j == pl.num_programs(1) - 1)
    def _():
        o_ref[...] *= s_ref[...]                      # norm or 1/deg, once per tile


def _hop(a, h, row_scale, *, tm, tk, resident_h):
    np_, d = h.shape
    if resident_h:
        h_spec = pl.BlockSpec((np_, d), lambda i, j: (0, 0))   # resident, DMA'd once
    else:
        h_spec = pl.BlockSpec((tk, d), lambda i, j: (j, 0))    # streamed row tiles
    return pl.pallas_call(
        functools.partial(_hop_kernel, resident_h=resident_h),
        out_shape=jax.ShapeDtypeStruct((np_, d), jnp.float32),
        grid=(np_ // tm, np_ // tk),
        in_specs=[
            pl.BlockSpec((tk, tm), lambda i, j: (j, i)),       # bf16 A tile, streamed
            h_spec,
            pl.BlockSpec((tm, 1), lambda i, j: (i, 0)),        # per-output-row scale
        ],
        out_specs=pl.BlockSpec((tm, d), lambda i, j: (i, 0)),
        compiler_params=_params(("parallel", "arbitrary")),
    )(a, h, row_scale)


def _hop_tiles(np_, d, budget):
    """Pick (tm, tk, resident_h) for the hop kernel under a VMEM budget."""
    tm = tk = _pick_tile(np_)
    resident = 2 * np_ * d * 4 <= budget // 3       # double-buffered h fits easily

    def est(tm_, tk_):
        a = 2 * tk_ * tm_ * 2                        # bf16 A tile, double buffered
        hh = 2 * (np_ * d * 4 if resident else tk_ * d * 4)
        o = 2 * tm_ * d * 4                          # f32 output block (accumulator)
        s = 2 * tm_ * 512                            # (tm,1) f32 pads to (8,128) tiles
        return a + hh + o + s

    while est(tm, tk) > budget and tm > _LANE:
        tm = max(_LANE, tm // 2)
        tk = max(_LANE, tk // 2)
    return tm, tk, resident


# ----------------------------------------------------------------------------
# Forward wrapper
# ----------------------------------------------------------------------------
def sgc_graph_norm(adj):
    """Precompute (norm, inv_deg) for a static graph (the module's `cashed`
    flag): pass the results to sgc_forward to skip one full N^2 read of A."""
    n = adj.shape[0]
    np_ = _round_up(max(n, 1), _ROW_TILE)
    a_pad = jnp.pad(adj.astype(jnp.bfloat16), ((0, np_ - n), (0, np_ - n)))
    norm, inv = _graph_norm(a_pad)
    return norm[:n], inv[:n]


def sgc_forward(adj, features, weight, *, k=1, graph_norm=True,
                norm=None, inv_deg=None):
    """adj: [N, N] dense 0/1 adjacency (adj[u, v] = 1 iff edge u->v),
    features: [N, D_in], weight: [D_out, D_in] (PyTorch Linear layout).
    norm / inv_deg: optional precomputed [N, 1] vectors from sgc_graph_norm."""
    n, d_in = features.shape
    d_out = weight.shape[0]

    # Pad N to a multiple of the 512 row tile (so the large tile is actually
    # selected) and the feature dims to 128 lanes.  Zero rows/cols are inert:
    # the degree clamp keeps padded nodes' norm finite and their h rows stay 0.
    np_ = _round_up(max(n, 1), _ROW_TILE)
    dip = _round_up(max(d_in, 1), _LANE)
    dop = _round_up(max(d_out, 1), _LANE)

    # bf16 is exact for 0/1 and halves the dominant N^2 HBM stream on every
    # generation.  (fp8 on v7x would halve it again but has no v5e/v6e analog
    # that mixes with float h, so it is left as future work.)
    a_pad = jnp.pad(adj.astype(jnp.bfloat16), ((0, np_ - n), (0, np_ - n)))
    x_pad = jnp.pad(features.astype(jnp.float32), ((0, np_ - n), (0, dip - d_in)))
    w_pad = jnp.pad(weight.astype(jnp.float32), ((0, dop - d_out), (0, dip - d_in)))

    if graph_norm:
        if norm is None or inv_deg is None:
            norm, inv_deg = _graph_norm(a_pad)           # one N^2 pass (cacheable)
        else:
            norm = jnp.pad(norm.astype(jnp.float32).reshape(-1, 1),
                           ((0, np_ - n), (0, 0)))
            inv_deg = jnp.pad(inv_deg.astype(jnp.float32).reshape(-1, 1),
                              ((0, np_ - n), (0, 0)))
    else:
        norm = inv_deg = jnp.ones((np_, 1), jnp.float32)

    budget = _vmem_budget_bytes()
    d_hop = dop if (d_out <= d_in and k > 0) else dip
    tm, tk, resident = _hop_tiles(np_, d_hop, budget)

    # TODO(synk): PairNorm branch (pair_norm=True) not implemented; module
    # default is pair_norm=False.  Dropout(p=0) and bias=False are identities.
    if k == 0:
        out = _linear(x_pad, w_pad)
    elif d_out <= d_in:
        # (A_hat^k X) W^T == A_hat^k (X W^T): linear first -> narrower hops.
        # Norm folding:  h_k = N A^T N^2 A^T ... N^2 A^T N (X W^T), so the
        # initial N is fused into the linear finalize, intermediate hops
        # finalize with 1/deg and the last hop with norm.
        h = _linear(x_pad, w_pad, row_scale=norm)
        for t in range(k):
            h = _hop(a_pad, h, norm if t == k - 1 else inv_deg,
                     tm=tm, tk=tk, resident_h=resident)
        out = h
    else:
        h = _scale_rows(x_pad, norm)                     # one-time g0 = norm * X
        for t in range(k):
            h = _hop(a_pad, h, norm if t == k - 1 else inv_deg,
                     tm=tm, tk=tk, resident_h=resident)
        out = _linear(h, w_pad)

    return out[:n, :d_out]


# ----------------------------------------------------------------------------
# Pure-JAX reference mirroring the PyTorch/DGL forward exactly.
# ----------------------------------------------------------------------------
def _reference(adj, features, weight, *, k=1):
    hp = jax.lax.Precision.HIGHEST
    at = adj.T.astype(jnp.float32)
    h = features.astype(jnp.float32)
    deg = jnp.maximum(jnp.sum(at, axis=1, keepdims=True), 1.0)
    norm = deg ** -0.5
    for _ in range(k):
        h = h * norm
        h = jnp.dot(at, h, precision=hp)
        h = h * norm
    return jnp.dot(h, weight.T, precision=hp)


def _run_case(name, n, in_dim, out_dim, k, key, p):
    k_adj, k_feat, k_w = jax.random.split(key, 3)

    # Deterministic synthetic graph: random directed edges + self-loops.
    adj = (jax.random.uniform(k_adj, (n, n)) < p).astype(jnp.float32)
    adj = jnp.maximum(adj, jnp.eye(n, dtype=jnp.float32))

    features = jax.random.normal(k_feat, (n, in_dim), dtype=jnp.float32)

    # Xavier-uniform init for nn.Linear(in_dim, out_dim, bias=False).
    bound = (6.0 / (in_dim + out_dim)) ** 0.5
    weight = jax.random.uniform(
        k_w, (out_dim, in_dim), minval=-bound, maxval=bound, dtype=jnp.float32)

    out = jax.block_until_ready(sgc_forward(adj, features, weight, k=k))
    ref = _reference(adj, features, weight, k=k)

    assert out.shape == (n, out_dim), (name, out.shape)
    err = float(jnp.max(jnp.abs(out - ref)))
    assert jnp.allclose(out, ref, atol=1e-4, rtol=1e-4), (name, err)

    # Cached-norm path (module's `cashed` flag): must reproduce the same output
    # while skipping the in-call degree pass.
    nrm, inv = sgc_graph_norm(adj)
    out_cached = jax.block_until_ready(
        sgc_forward(adj, features, weight, k=k, norm=nrm, inv_deg=inv))
    assert jnp.allclose(out_cached, out, atol=1e-6, rtol=1e-6), name


if __name__ == "__main__":
    key = jax.random.PRNGKey(0)
    key1, key2 = jax.random.split(key)

    # Case 1: linear-first branch (out_dim <= in_dim), resident-h hop path,
    # single 512-row tile, k=2.
    _run_case("small", n=64, in_dim=32, out_dim=16, k=2, key=key1, p=0.10)

    # Case 2: multi-tile grid (3x3 A tiles after padding to 1536), k=2 (so the
    # 1/deg intermediate scale is exercised), linear-last branch
    # (out_dim > in_dim) with the one-time row-scale, streamed-h hop path.
    _run_case("multi_tile", n=1200, in_dim=300, out_dim=320, k=2, key=key2, p=0.05)

    print("KERNEL_OK")
</pallas_src>

<mosaic_0001>
module attributes {stable_mosaic.version = 11 : i64} {
  func.func @_norm_kernel(%arg0: i32, %arg1: i32, %arg2: memref<512x512xbf16, #tpu.memory_space<vmem>>, %arg3: memref<512x1xf32, #tpu.memory_space<vmem>>, %arg4: memref<512x1xf32, #tpu.memory_space<vmem>>) attributes {dimension_semantics = [#tpu.dimension_semantics<parallel>, #tpu.dimension_semantics<arbitrary>], iteration_bounds = array<i64: 1, 1>, scalar_prefetch = 0 : i64, scratch_operands = 0 : i64, tpu.core_type = #tpu.core_type<tc>, window_params = [{transform_indices = @transform_0, window_bounds = array<i64: 512, 512>}, {transform_indices = @transform_1, window_bounds = array<i64: 512, 1>}, {transform_indices = @transform_2, window_bounds = array<i64: 512, 1>}]} {
    %c0_i32 = arith.constant 0 : i32
    %0 = arith.cmpi eq, %arg1, %c0_i32 : i32
    %1 = arith.extui %0 : i1 to i32
    %c0_i32_0 = arith.constant 0 : i32
    %2 = arith.cmpi ne, %1, %c0_i32_0 : i32
    scf.if %2 {
      %cst_9 = arith.constant 0.000000e+00 : f32
      %12 = vector.broadcast %cst_9 : f32 to vector<512x1xf32>
      %c0_10 = arith.constant 0 : index
      %c0_11 = arith.constant 0 : index
      %13 = vector.load %arg3[%c0_10, %c0_11] : memref<512x1xf32, #tpu.memory_space<vmem>>, vector<512x1xf32>
      tpu.vector_store %arg3[%c0_10, %c0_11], %12 {strides = array<i32>} : memref<512x1xf32, #tpu.memory_space<vmem>>, vector<512x1xf32>,
      %cst_12 = arith.constant 0.000000e+00 : f32
      %14 = vector.broadcast %cst_12 : f32 to vector<512x1xf32>
      %c0_13 = arith.constant 0 : index
      %c0_14 = arith.constant 0 : index
      %15 = vector.load %arg4[%c0_13, %c0_14] : memref<512x1xf32, #tpu.memory_space<vmem>>, vector<512x1xf32>
      tpu.vector_store %arg4[%c0_13, %c0_14], %14 {strides = array<i32>} : memref<512x1xf32, #tpu.memory_space<vmem>>, vector<512x1xf32>,
    } else {
    }
    %cst = arith.constant 1.000000e+00 : bf16
    %3 = vector.broadcast %cst : bf16 to vector<512x1xbf16>
    %c0 = arith.constant 0 : index
    %c0_1 = arith.constant 0 : index
    %4 = vector.load %arg4[%c0, %c0_1] : memref<512x1xf32, #tpu.memory_space<vmem>>, vector<512x1xf32>
    %c0_2 = arith.constant 0 : index
    %c0_3 = arith.constant 0 : index
    %5 = vector.load %arg2[%c0_2, %c0_3] : memref<512x512xbf16, #tpu.memory_space<vmem>>, vector<512x512xbf16>
    %cst_4 = arith.constant dense<0.000000e+00> : vector<512x1xf32>
    %6 = tpu.matmul %5, %3, %cst_4 {dimension_numbers = #tpu.dot_dimension_numbers<[0], [0], [1], [1], [0, 1, 1, 1], [], []>} : vector<512x512xbf16>, vector<512x1xbf16>, vector<512x1xf32> -> vector<512x1xf32>
    %7 = arith.addf %4, %6 : vector<512x1xf32>
    %c0_5 = arith.constant 0 : index
    %c0_6 = arith.constant 0 : index
    %8 = vector.load %arg4[%c0_5, %c0_6] : memref<512x1xf32, #tpu.memory_space<vmem>>, vector<512x1xf32>
    tpu.vector_store %arg4[%c0_5, %c0_6], %7 {strides = array<i32>} : memref<512x1xf32, #tpu.memory_space<vmem>>, vector<512x1xf32>,
    %c0_i32_7 = arith.constant 0 : i32
    %9 = arith.cmpi eq, %arg1, %c0_i32_7 : i32
    %10 = arith.extui %9 : i1 to i32
    %c0_i32_8 = arith.constant 0 : i32
    %11 = arith.cmpi ne, %10, %c0_i32_8 : i32
    scf.if %11 {
      %c0_9 = arith.constant 0 : index
      %c0_10 = arith.constant 0 : index
      %12 = vector.load %arg4[%c0_9, %c0_10] : memref<512x1xf32, #tpu.memory_space<vmem>>, vector<512x1xf32>
      %cst_11 = arith.constant 1.000000e+00 : f32
      %13 = vector.broadcast %cst_11 : f32 to vector<512x1xf32>
      %14 = arith.maximumf %12, %13 : vector<512x1xf32>
      %15 = math.rsqrt %14 : vector<512x1xf32>
      %c0_12 = arith.constant 0 : index
      %c0_13 = arith.constant 0 : index
      %16 = vector.load %arg3[%c0_12, %c0_13] : memref<512x1xf32, #tpu.memory_space<vmem>>, vector<512x1xf32>
      tpu.vector_store %arg3[%c0_12, %c0_13], %15 {strides = array<i32>} : memref<512x1xf32, #tpu.memory_space<vmem>>, vector<512x1xf32>,
      %cst_14 = arith.constant 1.000000e+00 : f32
      %17 = vector.broadcast %cst_14 : f32 to vector<512x1xf32>
      %18 = arith.divf %17, %14 : vector<512x1xf32>
      %c0_15 = arith.constant 0 : index
      %c0_16 = arith.constant 0 : index
      %19 = vector.load %arg4[%c0_15, %c0_16] : memref<512x1xf32, #tpu.memory_space<vmem>>, vector<512x1xf32>
      tpu.vector_store %arg4[%c0_15, %c0_16], %18 {strides = array<i32>} : memref<512x1xf32, #tpu.memory_space<vmem>>, vector<512x1xf32>,
    } else {
    }
    return
  }
  func.func @transform_0(%arg0: i32, %arg1: i32) -> (i32, i32) {
    %c0_i32 = arith.constant 0 : i32
    return %arg1, %arg0 : i32, i32
  }
  func.func @transform_1(%arg0: i32, %arg1: i32) -> (i32, i32) {
    %c0_i32 = arith.constant 0 : i32
    %c0_i32_0 = arith.constant 0 : i32
    return %arg0, %c0_i32 : i32, i32
  }
  func.func @transform_2(%arg0: i32, %arg1: i32) -> (i32, i32) {
    %c0_i32 = arith.constant 0 : i32
    %c0_i32_0 = arith.constant 0 : i32
    return %arg0, %c0_i32 : i32, i32
  }
}

</mosaic_0001>

<bundles_post_ra>
// kernel: tpu_custom_call.1
= control target key start
LH: loop header
LB: loop body
LE: loop exit
PB: predicated region body
PF: predicated region fallthrough
CT: control target
= control target key end

     0   :  { %8 = vsyncpa [#allocation3], 0  ;;  %s3020_s9 = smov [#allocation2]   ;;  %s5014_s0 = inlined_call_operand.hbm [shape: bf16[512,512], index: 0, kind: input, shape index: {}]   ;;  %s5015_s1 = inlined_call_operand.vmem [shape: f32[512,1], index: 1, kind: output, shape index: {0}]   ;;  %s5016_s2 = inlined_call_operand.vmem [shape: f32[512,1], index: 2, kind: output, shape index: {1}]  }
   0x1   :  { %s14_s10 = sshll.u32 %s3020_s9, 4  ;;  %s2996_s13 = scalar_lea.hbm %s5014_s0, 16384  ;;  %s15_s10 = int_to_ptr.vmem [resolvable:$true] %s14_s10 }
   0x2   :  { %p2997_p0 = scmp.ne.s32.totalorder %s5014_s0, %s2996_s13  ;;  %p3000_p1 = scmp.lt.u32.totalorder %s2996_s13, %s5014_s0 }
   0x4   :  { %p3002_p2 = pnand %p3000_p1, %p2997_p0 }
   0x6   :  { %3005 = shalt.err (!%p3002_p2)
}
   0x7   :  { %s3006_s18 = scalar_lea.vmem %s15_s10, 16384  ;;  %p3011_p4 = scmp.lt.s32.totalorder %s15_s10, %s15_s10 }
   0x8   :  { %p3007_p3 = scmp.ne.s32.totalorder %s15_s10, %s3006_s18  ;;  %p3012_p5 = scmp.lt.s32.totalorder %s3006_s18, %s3006_s18 }
   0xa   :  { %p3013_p6 = por %p3012_p5, %p3011_p4 }
   0xc   :  { %p3014_p7 = pnand %p3013_p6, %p3007_p3 }
   0xe   :  { %3017 = shalt.err (!%p3014_p7)
}
   0xf   :  { %s3021_s19 = smov 256   ;;  %s3022_s20 = smov 16  }
  0x10   :  { %20 = dma.hbm_to_vmem [thread:$0]  %s5014_s0, 16384, %s15_s10, [#allocation3], %s3021_s19, %s3021_s19, %s3022_s20  }
  0x11   :  { %3018 = dma.done.wait [#allocation3], 16384  }
  0x12   :  { %3019 = vsyncadd [#allocation3], 4294950912  ;;  %v3023_v0 = vmov 0   ;;  %v3024_v1 = vmov 1065369472   ;;  %vm30_vm0 = vcmask 7168  }
  0x13   :  { %1247 = vmatprep.subr.bf16.mxu0 %v3023_v0  ;;  %1536 = vmatprep.subr.bf16.mxu1 %v3023_v0  ;;  %v2548_v2 = vld [vmem:[#allocation2 + $0x300] ss:$16 sps:$4 sm:$0xff]   ;;  %v2626_v34 = vld [vmem:[#allocation2 + $0x304] ss:$16 sps:$4 sm:$0xff]  }
  0x14   :  { %1248 = vmatpush1.bf16.msra.mxu0 %v3024_v1  ;;  %1537 = vmatpush1.bf16.msra.mxu1 %v3024_v1  ;;  %v2550_v3 = vld [vmem:[#allocation2 + $0x100] ss:$16 sps:$4 sm:$0xff]   ;;  %v2627_v35 = vld [vmem:[#allocation2 + $0x104] ss:$16 sps:$4 sm:$0xff]  }
  0x15   :  { %1249 = vmatprep.subr.bf16.mxu0 %v3023_v0  ;;  %1538 = vmatprep.subr.bf16.mxu1 %v3023_v0  ;;  %v2552_v4 = vld [vmem:[#allocation2 + $0x320] ss:$16 sps:$4 sm:$0xff]   ;;  %v2554_v36 = vld [vmem:[#allocation2 + $0x324] ss:$16 sps:$4 sm:$0xff]  }
  0x16   :  { %1183 = vxpose.xlu1.c.b16.start [1/8] %v2548_v2, 128  ;;  %1055 = vxpose.xlu0.c.b16.start [1/8] %v2550_v3, 128  ;;  %v2555_v5 = vld [vmem:[#allocation2 + $0x120] ss:$16 sps:$4 sm:$0xff]   ;;  %v2557_v37 = vld [vmem:[#allocation2 + $0x124] ss:$16 sps:$4 sm:$0xff]  }
  0x17   :  { %v2558_v6 = vld [vmem:[#allocation2 + $0x340] ss:$16 sps:$4 sm:$0xff]   ;;  %v2560_v38 = vld [vmem:[#allocation2 + $0x344] ss:$16 sps:$4 sm:$0xff]  }
  0x18   :  { %1250 = vmatpush1.bf16.msra.mxu0 %v3024_v1  ;;  %1539 = vmatpush1.bf16.msra.mxu1 %v3024_v1  ;;  %v2561_v7 = vld [vmem:[#allocation2 + $0x140] ss:$16 sps:$4 sm:$0xff]   ;;  %v2563_v39 = vld [vmem:[#allocation2 + $0x144] ss:$16 sps:$4 sm:$0xff]  }
  0x19   :  { %1251 = vmatprep.subr.bf16.mxu0 %v3023_v0  ;;  %1540 = vmatprep.subr.bf16.mxu1 %v3023_v0  ;;  %v2564_v8 = vld [vmem:[#allocation2 + $0x360] ss:$16 sps:$4 sm:$0xff]   ;;  %v2566_v40 = vld [vmem:[#allocation2 + $0x364] ss:$16 sps:$4 sm:$0xff]  }
  0x1a   :  { %1184 = vxpose.xlu1.c.b16.cont [2/8] %v2552_v4, 128  ;;  %1056 = vxpose.xlu0.c.b16.cont [2/8] %v2555_v5, 128  ;;  %v2567_v9 = vld [vmem:[#allocation2 + $0x160] ss:$16 sps:$4 sm:$0xff]   ;;  %v2569_v41 = vld [vmem:[#allocation2 + $0x164] ss:$16 sps:$4 sm:$0xff]  }
  0x1b   :  { %v2570_v10 = vld [vmem:[#allocation2 + $0x380] ss:$16 sps:$4 sm:$0xff]   ;;  %v2572_v42 = vld [vmem:[#allocation2 + $0x384] ss:$16 sps:$4 sm:$0xff]  }
  0x1c   :  { %1252 = vmatpush1.bf16.msra.mxu0 %v3024_v1  ;;  %1541 = vmatpush1.bf16.msra.mxu1 %v3024_v1  ;;  %v2573_v11 = vld [vmem:[#allocation2 + $0x180] ss:$16 sps:$4 sm:$0xff]   ;;  %v2575_v43 = vld [vmem:[#allocation2 + $0x184] ss:$16 sps:$4 sm:$0xff]  }
  0x1d   :  { %1253 = vmatprep.subr.bf16.mxu0 %v3023_v0  ;;  %1542 = vmatprep.subr.bf16.mxu1 %v3023_v0  ;;  %v2576_v12 = vld [vmem:[#allocation2 + $0x3a0] ss:$16 sps:$4 sm:$0xff]   ;;  %v2578_v44 = vld [vmem:[#allocation2 + $0x3a4] ss:$16 sps:$4 sm:$0xff]  }
  0x1e   :  { %1185 = vxpose.xlu1.c.b16.cont [3/8] %v2558_v6, 128  ;;  %1057 = vxpose.xlu0.c.b16.cont [3/8] %v2561_v7, 128  ;;  %v2579_v13 = vld [vmem:[#allocation2 + $0x1a0] ss:$16 sps:$4 sm:$0xff]   ;;  %v2581_v45 = vld [vmem:[#allocation2 + $0x1a4] ss:$16 sps:$4 sm:$0xff]  }
  0x1f   :  { %v2582_v14 = vld [vmem:[#allocation2 + $0x3c0] ss:$16 sps:$4 sm:$0xff]   ;;  %v2584_v46 = vld [vmem:[#allocation2 + $0x3c4] ss:$16 sps:$4 sm:$0xff]  }
  0x20   :  { %1254 = vmatpush1.bf16.msra.mxu0 %v3024_v1  ;;  %1543 = vmatpush1.bf16.msra.mxu1 %v3024_v1  ;;  %v2585_v15 = vld [vmem:[#allocation2 + $0x1c0] ss:$16 sps:$4 sm:$0xff]   ;;  %v2587_v47 = vld [vmem:[#allocation2 + $0x1c4] ss:$16 sps:$4 sm:$0xff]  }
  0x21   :  { %1255 = vmatprep.subr.bf16.mxu0 %v3023_v0  ;;  %1544 = vmatprep.subr.bf16.mxu1 %v3023_v0  ;;  %v2588_v16 = vld [vmem:[#allocation2 + $0x3e0] ss:$16 sps:$4 sm:$0xff]   ;;  %v2590_v48 = vld [vmem:[#allocation2 + $0x3e4] ss:$16 sps:$4 sm:$0xff]  }
  0x22   :  { %1186 = vxpose.xlu1.c.b16.cont [4/8] %v2564_v8, 128  ;;  %1058 = vxpose.xlu0.c.b16.cont [4/8] %v2567_v9, 128  ;;  %v2591_v17 = vld [vmem:[#allocation2 + $0x1e0] ss:$16 sps:$4 sm:$0xff]   ;;  %v2593_v49 = vld [vmem:[#allocation2 + $0x1e4] ss:$16 sps:$4 sm:$0xff]  }
  0x23   :  { %v2594_v18 = vld [vmem:[#allocation2 + $0x200] ss:$16 sps:$4 sm:$0xff]   ;;  %v2628_v50 = vld [vmem:[#allocation2 + $0x204] ss:$16 sps:$4 sm:$0xff]  }
  0x24   :  { %1256 = vmatpush1.bf16.msra.mxu0 %v3024_v1  ;;  %1545 = vmatpush1.bf16.msra.mxu1 %v3024_v1  ;;  %v2596_v19 = vld [vmem:[#allocation2] ss:$16 sps:$4 sm:$0xff]   ;;  %v2629_v51 = vld [vmem:[#allocation2 + $0x4] ss:$16 sps:$4 sm:$0xff]  }
  0x25   :  { %1257 = vmatprep.subr.bf16.mxu0 %v3023_v0  ;;  %1546 = vmatprep.subr.bf16.mxu1 %v3023_v0  ;;  %v2598_v20 = vld [vmem:[#allocation2 + $0x220] ss:$16 sps:$4 sm:$0xff]   ;;  %v2630_v52 = vld [vmem:[#allocation2 + $0x224] ss:$16 sps:$4 sm:$0xff]  }
  0x26   :  { %1187 = vxpose.xlu1.c.b16.cont [5/8] %v2570_v10, 128  ;;  %1059 = vxpose.xlu0.c.b16.cont [5/8] %v2573_v11, 128  ;;  %v2600_v21 = vld [vmem:[#allocation2 + $0x20] ss:$16 sps:$4 sm:$0xff]   ;;  %v2631_v53 = vld [vmem:[#allocation2 + $0x24] ss:$16 sps:$4 sm:$0xff]  }
  0x27   :  { %v2602_v22 = vld [vmem:[#allocation2 + $0x240] ss:$16 sps:$4 sm:$0xff]   ;;  %v2632_v54 = vld [vmem:[#allocation2 + $0x244] ss:$16 sps:$4 sm:$0xff]  }
  0x28   :  { %1258 = vmatpush1.bf16.msra.mxu0 %v3024_v1  ;;  %1547 = vmatpush1.bf16.msra.mxu1 %v3024_v1  ;;  %v2604_v23 = vld [vmem:[#allocation2 + $0x40] ss:$16 sps:$4 sm:$0xff]   ;;  %v2633_v55 = vld [vmem:[#allocation2 + $0x44] ss:$16 sps:$4 sm:$0xff]  }
  0x29   :  { %1259 = vmatprep.subr.bf16.mxu0 %v3023_v0  ;;  %1548 = vmatprep.subr.bf16.mxu1 %v3023_v0  ;;  %v2606_v24 = vld [vmem:[#allocation2 + $0x260] ss:$16 sps:$4 sm:$0xff]   ;;  %v2634_v58 = vld [vmem:[#allocation2 + $0x264] ss:$16 sps:$4 sm:$0xff]  }
  0x2a   :  { %1188 = vxpose.xlu1.c.b16.cont [6/8] %v2576_v12, 128  ;;  %1060 = vxpose.xlu0.c.b16.cont [6/8] %v2579_v13, 128  ;;  %v2608_v25 = vld [vmem:[#allocation2 + $0x60] ss:$16 sps:$4 sm:$0xff]   ;;  %v2635_v59 = vld [vmem:[#allocation2 + $0x64] ss:$16 sps:$4 sm:$0xff]  }
  0x2b   :  { %v2610_v26 = vld [vmem:[#allocation2 + $0x280] ss:$16 sps:$4 sm:$0xff]   ;;  %v2636_v62 = vld [vmem:[#allocation2 + $0x284] ss:$16 sps:$4 sm:$0xff]  }
  0x2c   :  { %1260 = vmatpush1.bf16.msra.mxu0 %v3024_v1  ;;  %1549 = vmatpush1.bf16.msra.mxu1 %v3024_v1  ;;  %v2612_v27 = vld [vmem:[#allocation2 + $0x80] ss:$16 sps:$4 sm:$0xff]   ;;  %v2637_v63 = vld [vmem:[#allocation2 + $0x84] ss:$16 sps:$4 sm:$0xff]  }
  0x2d   :  { %1261 = vmatprep.subr.bf16.mxu0 %v3023_v0  ;;  %1550 = vmatprep.subr.bf16.mxu1 %v3023_v0  ;;  %v2614_v28 = vld [vmem:[#allocation2 + $0x2a0] ss:$16 sps:$4 sm:$0xff]   ;;  %v2638_v2 = vld [vmem:[#allocation2 + $0x2a4] ss:$16 sps:$4 sm:$0xff]  }
  0x2e   :  { %1189 = vxpose.xlu1.c.b16.cont [7/8] %v2582_v14, 128  ;;  %1061 = vxpose.xlu0.c.b16.cont [7/8] %v2585_v15, 128  ;;  %v2616_v29 = vld [vmem:[#allocation2 + $0xa0] ss:$16 sps:$4 sm:$0xff]   ;;  %v2639_v3 = vld [vmem:[#allocation2 + $0xa4] ss:$16 sps:$4 sm:$0xff]   ;;  %v2644_v14 = vld [vmem:[#allocation2 + $0x308] ss:$16 sps:$4 sm:$0xff]  }
  0x2f   :  { %v2618_v30 = vld [vmem:[#allocation2 + $0x2c0] ss:$16 sps:$4 sm:$0xff]   ;;  %v2640_v6 = vld [vmem:[#allocation2 + $0x2c4] ss:$16 sps:$4 sm:$0xff]   ;;  %v2647_v15 = vld [vmem:[#allocation2 + $0x108] ss:$16 sps:$4 sm:$0xff]  }
  0x30   :  { %1262 = vmatpush1.bf16.msra.mxu0 %v3024_v1  ;;  %1551 = vmatpush1.bf16.msra.mxu1 %v3024_v1  ;;  %v2620_v31 = vld [vmem:[#allocation2 + $0xc0] ss:$16 sps:$4 sm:$0xff]   ;;  %v2641_v7 = vld [vmem:[#allocation2 + $0xc4] ss:$16 sps:$4 sm:$0xff]  }
  0x31   :  { %1263 = vmatprep.subr.bf16.mxu0 %v3023_v0  ;;  %1552 = vmatprep.subr.bf16.mxu1 %v3023_v0  ;;  %v2622_v32 = vld [vmem:[#allocation2 + $0x2e0] ss:$16 sps:$4 sm:$0xff]   ;;  %v2642_v10 = vld [vmem:[#allocation2 + $0x2e4] ss:$16 sps:$4 sm:$0xff]  }
  0x32   :  { %1190 = vxpose.xlu1.c.b16.end [8/8] %v2588_v16, 128  ;;  %1062 = vxpose.xlu0.c.b16.end [8/8] %v2591_v17, 128  ;;  %v2624_v33 = vld [vmem:[#allocation2 + $0xe0] ss:$16 sps:$4 sm:$0xff]   ;;  %v2643_v11 = vld [vmem:[#allocation2 + $0xe4] ss:$16 sps:$4 sm:$0xff]  }
  0x34   :  { %1264 = vmatpush1.bf16.msra.mxu0 %v3024_v1  ;;  %1553 = vmatpush1.bf16.msra.mxu1 %v3024_v1 }
  0x35   :  { %1265 = vmatprep.subr.bf16.mxu0 %v3023_v0  ;;  %1554 = vmatprep.subr.bf16.mxu1 %v3023_v0 }
  0x36   :  { %1119 = vxpose.xlu1.c.b16.start [1/8] %v2594_v18, 128  ;;  %991 = vxpose.xlu0.c.b16.start [1/8] %v2596_v19, 128  ;;  %v2650_v18 = vld [vmem:[#allocation2 + $0x328] ss:$16 sps:$4 sm:$0xff]  }
  0x37   :  { %v2652_v19 = vld [vmem:[#allocation2 + $0x128] ss:$16 sps:$4 sm:$0xff]  }
  0x38   :  { %1266 = vmatpush1.bf16.msra.mxu0 %v3024_v1  ;;  %1555 = vmatpush1.bf16.msra.mxu1 %v3024_v1 }
  0x39   :  { %1267 = vmatprep.subr.bf16.mxu0 %v3023_v0  ;;  %1556 = vmatprep.subr.bf16.mxu1 %v3023_v0 }
  0x3a   :  { %1120 = vxpose.xlu1.c.b16.cont [2/8] %v2598_v20, 128  ;;  %992 = vxpose.xlu0.c.b16.cont [2/8] %v2600_v21, 128 }
  0x3c   :  { %1268 = vmatpush1.bf16.msra.mxu0 %v3024_v1  ;;  %1557 = vmatpush1.bf16.msra.mxu1 %v3024_v1 }
  0x3d   :  { %1269 = vmatprep.subr.bf16.mxu0 %v3023_v0  ;;  %1558 = vmatprep.subr.bf16.mxu1 %v3023_v0 }
  0x3e   :  { %1121 = vxpose.xlu1.c.b16.cont [3/8] %v2602_v22, 128  ;;  %993 = vxpose.xlu0.c.b16.cont [3/8] %v2604_v23, 128  ;;  %v2654_v22 = vld [vmem:[#allocation2 + $0x348] ss:$16 sps:$4 sm:$0xff]  }
  0x3f   :  { %v2656_v23 = vld [vmem:[#allocation2 + $0x148] ss:$16 sps:$4 sm:$0xff]  }
  0x40   :  { %1270 = vmatpush1.bf16.msra.mxu0 %v3024_v1  ;;  %1559 = vmatpush1.bf16.msra.mxu1 %v3024_v1 }
  0x41   :  { %1271 = vmatprep.subr.bf16.mxu0 %v3023_v0  ;;  %1560 = vmatprep.subr.bf16.mxu1 %v3023_v0 }
  0x42   :  { %1122 = vxpose.xlu1.c.b16.cont [4/8] %v2606_v24, 128  ;;  %994 = vxpose.xlu0.c.b16.cont [4/8] %v2608_v25, 128 }
  0x44   :  { %1272 = vmatpush1.bf16.msra.mxu0 %v3024_v1  ;;  %1561 = vmatpush1.bf16.msra.mxu1 %v3024_v1 }
  0x45   :  { %1273 = vmatprep.subr.bf16.mxu0 %v3023_v0  ;;  %1562 = vmatprep.subr.bf16.mxu1 %v3023_v0 }
  0x46   :  { %1123 = vxpose.xlu1.c.b16.cont [5/8] %v2610_v26, 128  ;;  %995 = vxpose.xlu0.c.b16.cont [5/8] %v2612_v27, 128  ;;  %v2658_v26 = vld [vmem:[#allocation2 + $0x368] ss:$16 sps:$4 sm:$0xff]  }
  0x47   :  { %v2660_v27 = vld [vmem:[#allocation2 + $0x168] ss:$16 sps:$4 sm:$0xff]  }
  0x48   :  { %1274 = vmatpush1.bf16.msra.mxu0 %v3024_v1  ;;  %1563 = vmatpush1.bf16.msra.mxu1 %v3024_v1 }
  0x49   :  { %1275 = vmatprep.subr.bf16.mxu0 %v3023_v0  ;;  %1564 = vmatprep.subr.bf16.mxu1 %v3023_v0 }
  0x4a   :  { %1124 = vxpose.xlu1.c.b16.cont [6/8] %v2614_v28, 128  ;;  %996 = vxpose.xlu0.c.b16.cont [6/8] %v2616_v29, 128 }
  0x4c   :  { %1276 = vmatpush1.bf16.msra.mxu0 %v3024_v1  ;;  %1565 = vmatpush1.bf16.msra.mxu1 %v3024_v1 }
  0x4d   :  { %1277 = vmatprep.subr.bf16.mxu0 %v3023_v0  ;;  %1566 = vmatprep.subr.bf16.mxu1 %v3023_v0 }
  0x4e   :  { %1125 = vxpose.xlu1.c.b16.cont [7/8] %v2618_v30, 128  ;;  %997 = vxpose.xlu0.c.b16.cont [7/8] %v2620_v31, 128  ;;  %v2662_v30 = vld [vmem:[#allocation2 + $0x388] ss:$16 sps:$4 sm:$0xff]  }
  0x4f   :  { %v2664_v31 = vld [vmem:[#allocation2 + $0x188] ss:$16 sps:$4 sm:$0xff]  }
  0x50   :  { %1278 = vmatpush1.bf16.msra.mxu0 %v3024_v1  ;;  %1567 = vmatpush1.bf16.msra.mxu1 %v3024_v1 }
  0x52   :  { %1126 = vxpose.xlu1.c.b16.end [8/8] %v2622_v32, 128  ;;  %998 = vxpose.xlu0.c.b16.end [8/8] %v2624_v33, 128 }
  0x56   :  { %1199 = vxpose.xlu1.c.b16.start [1/8] %v2626_v34, 128  ;;  %1071 = vxpose.xlu0.c.b16.start [1/8] %v2627_v35, 128  ;;  %v2666_v34 = vld [vmem:[#allocation2 + $0x3a8] ss:$16 sps:$4 sm:$0xff]  }
  0x57   :  { %v2668_v35 = vld [vmem:[#allocation2 + $0x1a8] ss:$16 sps:$4 sm:$0xff]  }
  0x5a   :  { %1200 = vxpose.xlu1.c.b16.cont [2/8] %v2554_v36, 128  ;;  %1072 = vxpose.xlu0.c.b16.cont [2/8] %v2557_v37, 128 }
  0x5e   :  { %1201 = vxpose.xlu1.c.b16.cont [3/8] %v2560_v38, 128  ;;  %1073 = vxpose.xlu0.c.b16.cont [3/8] %v2563_v39, 128  ;;  %v2670_v38 = vld [vmem:[#allocation2 + $0x3c8] ss:$16 sps:$4 sm:$0xff]  }
  0x5f   :  { %v2672_v39 = vld [vmem:[#allocation2 + $0x1c8] ss:$16 sps:$4 sm:$0xff]  }
  0x62   :  { %1202 = vxpose.xlu1.c.b16.cont [4/8] %v2566_v40, 128  ;;  %1074 = vxpose.xlu0.c.b16.cont [4/8] %v2569_v41, 128 }
  0x66   :  { %1203 = vxpose.xlu1.c.b16.cont [5/8] %v2572_v42, 128  ;;  %1075 = vxpose.xlu0.c.b16.cont [5/8] %v2575_v43, 128  ;;  %v2674_v42 = vld [vmem:[#allocation2 + $0x3e8] ss:$16 sps:$4 sm:$0xff]  }
  0x67   :  { %v2676_v43 = vld [vmem:[#allocation2 + $0x1e8] ss:$16 sps:$4 sm:$0xff]  }
  0x6a   :  { %1204 = vxpose.xlu1.c.b16.cont [6/8] %v2578_v44, 128  ;;  %1076 = vxpose.xlu0.c.b16.cont [6/8] %v2581_v45, 128 }
  0x6e   :  { %1205 = vxpose.xlu1.c.b16.cont [7/8] %v2584_v46, 128  ;;  %1077 = vxpose.xlu0.c.b16.cont [7/8] %v2587_v47, 128  ;;  %v2678_v46 = vld [vmem:[#allocation2 + $0x208] ss:$16 sps:$4 sm:$0xff]  }
  0x6f   :  { %v2681_v47 = vld [vmem:[#allocation2 + $0x8] ss:$16 sps:$4 sm:$0xff]  }
  0x72   :  { %1206 = vxpose.xlu1.c.b16.end [8/8] %v2590_v48, 128  ;;  %1078 = vxpose.xlu0.c.b16.end [8/8] %v2593_v49, 128 }
  0x76   :  { %1135 = vxpose.xlu1.c.b16.start [1/8] %v2628_v50, 128  ;;  %1007 = vxpose.xlu0.c.b16.start [1/8] %v2629_v51, 128  ;;  %v2684_v50 = vld [vmem:[#allocation2 + $0x228] ss:$16 sps:$4 sm:$0xff]  }
  0x77   :  { %v2686_v51 = vld [vmem:[#allocation2 + $0x28] ss:$16 sps:$4 sm:$0xff]  }
  0x7a   :  { %1136 = vxpose.xlu1.c.b16.cont [2/8] %v2630_v52, 128  ;;  %1008 = vxpose.xlu0.c.b16.cont [2/8] %v2631_v53, 128 }
  0x7c   :  { %v1191_v56 = vpop.trf.xlu1  ;;  %v1063_v57 = vpop.trf.xlu0 }
  0x7d   :  { %1568 = vmatprep.mubr.bf16.mxu1 %v1191_v56  ;;  %1279 = vmatprep.mubr.bf16.mxu0 %v1063_v57 }
  0x7e   :  { %1137 = vxpose.xlu1.c.b16.cont [3/8] %v2632_v54, 128  ;;  %1009 = vxpose.xlu0.c.b16.cont [3/8] %v2633_v55, 128  ;;  %v2688_v54 = vld [vmem:[#allocation2 + $0x248] ss:$16 sps:$4 sm:$0xff]  }
  0x7f   :  { %v2690_v55 = vld [vmem:[#allocation2 + $0x48] ss:$16 sps:$4 sm:$0xff]  }
  0x80   :  { %v1192_v60 = vpop.trf.xlu1  ;;  %v1064_v61 = vpop.trf.xlu0 }
  0x82   :  { %1138 = vxpose.xlu1.c.b16.cont [4/8] %v2634_v58, 128  ;;  %1010 = vxpose.xlu0.c.b16.cont [4/8] %v2635_v59, 128  ;;  %v2692_v58 = vld [vmem:[#allocation2 + $0x268] ss:$16 sps:$4 sm:$0xff]  }
  0x83   :  { %v2694_v59 = vld [vmem:[#allocation2 + $0x68] ss:$16 sps:$4 sm:$0xff]  }
  0x84   :  { %v1193_v0 = vpop.trf.xlu1  ;;  %v1065_v1 = vpop.trf.xlu0 }
  0x86   :  { %1139 = vxpose.xlu1.c.b16.cont [5/8] %v2636_v62, 128  ;;  %1011 = vxpose.xlu0.c.b16.cont [5/8] %v2637_v63, 128  ;;  %v2696_v62 = vld [vmem:[#allocation2 + $0x288] ss:$16 sps:$4 sm:$0xff]  }
  0x87   :  { %v2698_v63 = vld [vmem:[#allocation2 + $0x88] ss:$16 sps:$4 sm:$0xff]  }
  0x88   :  { %v3117_v4 = vpop.trf.xlu1  ;;  %v3119_v5 = vpop.trf.xlu0 }
  0x8a   :  { %1140 = vxpose.xlu1.c.b16.cont [6/8] %v2638_v2, 128  ;;  %1012 = vxpose.xlu0.c.b16.cont [6/8] %v2639_v3, 128  ;;  %v2700_v2 = vld [vmem:[#allocation2 + $0x2a8] ss:$16 sps:$4 sm:$0xff]  }
  0x8b   :  { %v2702_v3 = vld [vmem:[#allocation2 + $0xa8] ss:$16 sps:$4 sm:$0xff]  }
  0x8c   :  { %v3121_v8 = vpop.trf.xlu1  ;;  %v3123_v9 = vpop.trf.xlu0 }
  0x8e   :  { %1141 = vxpose.xlu1.c.b16.cont [7/8] %v2640_v6, 128  ;;  %1013 = vxpose.xlu0.c.b16.cont [7/8] %v2641_v7, 128  ;;  %v2704_v6 = vld [vmem:[#allocation2 + $0x2c8] ss:$16 sps:$4 sm:$0xff]  }
  0x8f   :  { %v2706_v7 = vld [vmem:[#allocation2 + $0xc8] ss:$16 sps:$4 sm:$0xff]  }
  0x90   :  { %v3125_v12 = vpop.trf.xlu1  ;;  %v3127_v13 = vpop.trf.xlu0 }
  0x92   :  { %1142 = vxpose.xlu1.c.b16.end [8/8] %v2642_v10, 128  ;;  %1014 = vxpose.xlu0.c.b16.end [8/8] %v2643_v11, 128  ;;  %v2708_v10 = vld [vmem:[#allocation2 + $0x2e8] ss:$16 sps:$4 sm:$0xff]  }
  0x93   :  { %v2710_v11 = vld [vmem:[#allocation2 + $0xe8] ss:$16 sps:$4 sm:$0xff]  }
  0x94   :  { %v3129_v16 = vpop.trf.xlu1  ;;  %v3131_v17 = vpop.trf.xlu0 }
  0x96   :  { %1215 = vxpose.xlu1.c.b16.start [1/8] %v2644_v14, 128  ;;  %1087 = vxpose.xlu0.c.b16.start [1/8] %v2647_v15, 128  ;;  %v2646_v14 = vld [vmem:[#allocation2 + $0x30c] ss:$16 sps:$4 sm:$0xff]  }
  0x97   :  { %v2649_v15 = vld [vmem:[#allocation2 + $0x10c] ss:$16 sps:$4 sm:$0xff]  }
  0x98   :  { %v3133_v20 = vpop.trf.xlu1  ;;  %v3135_v21 = vpop.trf.xlu0 }
  0x9a   :  { %1216 = vxpose.xlu1.c.b16.cont [2/8] %v2650_v18, 128  ;;  %1088 = vxpose.xlu0.c.b16.cont [2/8] %v2652_v19, 128  ;;  %v2712_v18 = vld [vmem:[#allocation2 + $0x32c] ss:$16 sps:$4 sm:$0xff]  }
  0x9b   :  { %v2713_v19 = vld [vmem:[#allocation2 + $0x12c] ss:$16 sps:$4 sm:$0xff]  }
  0x9c   :  { %v1127_v24 = vpop.trf.xlu1  ;;  %v999_v25 = vpop.trf.xlu0 }
  0x9d   :  { %1569 = vmatmul.mubr.bf16.vlgmr.msra.gmra.mrb[0].mxu1 %v1127_v24  ;;  %1280 = vmatmul.mubr.bf16.vlgmr.msra.gmra.mrb[0].mxu0 %v999_v25 }
  0x9e   :  { %1217 = vxpose.xlu1.c.b16.cont [3/8] %v2654_v22, 128  ;;  %1576 = vmatprep.mubr.bf16.mxu1 %v1192_v60  ;;  %v2714_v22 = vld [vmem:[#allocation2 + $0x34c] ss:$16 sps:$4 sm:$0xff]  }
  0x9f   :  { %1089 = vxpose.xlu0.c.b16.cont [3/8] %v2656_v23, 128  ;;  %1287 = vmatprep.mubr.bf16.mxu0 %v1064_v61  ;;  %v2715_v23 = vld [vmem:[#allocation2 + $0x14c] ss:$16 sps:$4 sm:$0xff]  }
  0xa0   :  { %v1128_v28 = vpop.trf.xlu1  ;;  %v1000_v29 = vpop.trf.xlu0 }
  0xa2   :  { %1218 = vxpose.xlu1.c.b16.cont [4/8] %v2658_v26, 128  ;;  %v2716_v26 = vld [vmem:[#allocation2 + $0x36c] ss:$16 sps:$4 sm:$0xff]  }
  0xa3   :  { %1090 = vxpose.xlu0.c.b16.cont [4/8] %v2660_v27, 128  ;;  %v2717_v27 = vld [vmem:[#allocation2 + $0x16c] ss:$16 sps:$4 sm:$0xff]  }
  0xa4   :  { %v1129_v32 = vpop.trf.xlu1  ;;  %v1001_v33 = vpop.trf.xlu0 }
  0xa5   :  { %1577 = vmatmul.mubr.bf16.gmra.mrb[4].mxu1 %v1128_v28  ;;  %1288 = vmatmul.mubr.bf16.gmra.mrb[4].mxu0 %v1000_v29 }
  0xa6   :  { %1219 = vxpose.xlu1.c.b16.cont [5/8] %v2662_v30, 128  ;;  %1584 = vmatprep.mubr.bf16.mxu1 %v1193_v0  ;;  %v2718_v30 = vld [vmem:[#allocation2 + $0x38c] ss:$16 sps:$4 sm:$0xff]  }
  0xa7   :  { %1091 = vxpose.xlu0.c.b16.cont [5/8] %v2664_v31, 128  ;;  %1295 = vmatprep.mubr.bf16.mxu0 %v1065_v1  ;;  %v2719_v31 = vld [vmem:[#allocation2 + $0x18c] ss:$16 sps:$4 sm:$0xff]  }
  0xa8   :  { %v1130_v36 = vpop.trf.xlu1  ;;  %v1002_v37 = vpop.trf.xlu0 }
  0xaa   :  { %1220 = vxpose.xlu1.c.b16.cont [6/8] %v2666_v34, 128  ;;  %v2720_v34 = vld [vmem:[#allocation2 + $0x3ac] ss:$16 sps:$4 sm:$0xff]  }
  0xab   :  { %1092 = vxpose.xlu0.c.b16.cont [6/8] %v2668_v35, 128  ;;  %v2721_v35 = vld [vmem:[#allocation2 + $0x1ac] ss:$16 sps:$4 sm:$0xff]  }
  0xac   :  { %v1131_v40 = vpop.trf.xlu1  ;;  %v1003_v41 = vpop.trf.xlu0 }
  0xad   :  { %1585 = vmatmul.mubr.bf16.gmra.mrb[8].mxu1 %v1129_v32  ;;  %1296 = vmatmul.mubr.bf16.gmra.mrb[8].mxu0 %v1001_v33 }
  0xae   :  { %1221 = vxpose.xlu1.c.b16.cont [7/8] %v2670_v38, 128  ;;  %1592 = vmatprep.mubr.bf16.mxu1 %v3117_v4  ;;  %v3179_v38 = vld [vmem:[#allocation2 + $0x3cc] ss:$16 sps:$4 sm:$0xff]  }
  0xaf   :  { %1093 = vxpose.xlu0.c.b16.cont [7/8] %v2672_v39, 128  ;;  %1303 = vmatprep.mubr.bf16.mxu0 %v3119_v5  ;;  %v3181_v39 = vld [vmem:[#allocation2 + $0x1cc] ss:$16 sps:$4 sm:$0xff]  }
  0xb0   :  { %v1132_v44 = vpop.trf.xlu1  ;;  %v1004_v45 = vpop.trf.xlu0 }
  0xb2   :  { %1222 = vxpose.xlu1.c.b16.end [8/8] %v2674_v42, 128  ;;  %v3025_v42 = vmov 0.0  }
  0xb3   :  { %1094 = vxpose.xlu0.c.b16.end [8/8] %v2676_v43, 128  ;;  %31 = vst.msk [vmem:[%s5015_s1] sm:$0xff] %vm30_vm0, %v3025_v42  ;;  %95 = vst.msk [vmem:[%s5016_s2] sm:$0xff] %vm30_vm0, %v3025_v42  ;;  %v2724_v43 = vld [vmem:[#allocation2 + $0x3ec] ss:$16 sps:$4 sm:$0xff]  }
  0xb4   :  { %v1133_v48 = vpop.trf.xlu1  ;;  %v1005_v49 = vpop.trf.xlu0  ;;  %32 = vst.msk [vmem:[%s5015_s1 + $0x8] sm:$0xff] %vm30_vm0, %v3025_v42  ;;  %33 = vst.msk [vmem:[%s5015_s1 + $0x10] sm:$0xff] %vm30_vm0, %v3025_v42 }
  0xb5   :  { %1593 = vmatmul.mubr.bf16.gmra.mrb[12].mxu1 %v1130_v36  ;;  %1304 = vmatmul.mubr.bf16.gmra.mrb[12].mxu0 %v1002_v37  ;;  %34 = vst.msk [vmem:[%s5015_s1 + $0x18] sm:$0xff] %vm30_vm0, %v3025_v42  ;;  %35 = vst.msk [vmem:[%s5015_s1 + $0x20] sm:$0xff] %vm30_vm0, %v3025_v42 }
  0xb6   :  { %1151 = vxpose.xlu1.c.b16.start [1/8] %v2678_v46, 128  ;;  %1600 = vmatprep.mubr.bf16.mxu1 %v3121_v8  ;;  %36 = vst.msk [vmem:[%s5015_s1 + $0x28] sm:$0xff] %vm30_vm0, %v3025_v42  ;;  %37 = vst.msk [vmem:[%s5015_s1 + $0x30] sm:$0xff] %vm30_vm0, %v3025_v42 }
  0xb7   :  { %1023 = vxpose.xlu0.c.b16.start [1/8] %v2681_v47, 128  ;;  %1311 = vmatprep.mubr.bf16.mxu0 %v3123_v9  ;;  %38 = vst.msk [vmem:[%s5015_s1 + $0x38] sm:$0xff] %vm30_vm0, %v3025_v42  ;;  %39 = vst.msk [vmem:[%s5015_s1 + $0x40] sm:$0xff] %vm30_vm0, %v3025_v42  ;;  %v2680_v47 = vld [vmem:[#allocation2 + $0x20c] ss:$16 sps:$4 sm:$0xff]  }
  0xb8   :  { %v1134_v52 = vpop.trf.xlu1  ;;  %v1006_v53 = vpop.trf.xlu0  ;;  %40 = vst.msk [vmem:[%s5015_s1 + $0x48] sm:$0xff] %vm30_vm0, %v3025_v42  ;;  %41 = vst.msk [vmem:[%s5015_s1 + $0x50] sm:$0xff] %vm30_vm0, %v3025_v42 }
  0xb9   :  { %42 = vst.msk [vmem:[%s5015_s1 + $0x58] sm:$0xff] %vm30_vm0, %v3025_v42  ;;  %43 = vst.msk [vmem:[%s5015_s1 + $0x60] sm:$0xff] %vm30_vm0, %v3025_v42 }
  0xba   :  { %1152 = vxpose.xlu1.c.b16.cont [2/8] %v2684_v50, 128  ;;  %44 = vst.msk [vmem:[%s5015_s1 + $0x68] sm:$0xff] %vm30_vm0, %v3025_v42  ;;  %45 = vst.msk [vmem:[%s5015_s1 + $0x70] sm:$0xff] %vm30_vm0, %v3025_v42 }
  0xbb   :  { %1024 = vxpose.xlu0.c.b16.cont [2/8] %v2686_v51, 128  ;;  %46 = vst.msk [vmem:[%s5015_s1 + $0x78] sm:$0xff] %vm30_vm0, %v3025_v42  ;;  %47 = vst.msk [vmem:[%s5015_s1 + $0x80] sm:$0xff] %vm30_vm0, %v3025_v42  ;;  %v2726_v51 = vld [vmem:[#allocation2 + $0x22c] ss:$16 sps:$4 sm:$0xff]  }
  0xbc   :  { %v1207_v56 = vpop.trf.xlu1  ;;  %v1079_v57 = vpop.trf.xlu0  ;;  %48 = vst.msk [vmem:[%s5015_s1 + $0x88] sm:$0xff] %vm30_vm0, %v3025_v42  ;;  %49 = vst.msk [vmem:[%s5015_s1 + $0x90] sm:$0xff] %vm30_vm0, %v3025_v42 }
  0xbd   :  { %1601 = vmatmul.mubr.bf16.gmra.mrb[16].mxu1 %v1131_v40  ;;  %1312 = vmatmul.mubr.bf16.gmra.mrb[16].mxu0 %v1003_v41  ;;  %50 = vst.msk [vmem:[%s5015_s1 + $0x98] sm:$0xff] %vm30_vm0, %v3025_v42  ;;  %51 = vst.msk [vmem:[%s5015_s1 + $0xa0] sm:$0xff] %vm30_vm0, %v3025_v42 }
  0xbe   :  { %1153 = vxpose.xlu1.c.b16.cont [3/8] %v2688_v54, 128  ;;  %1608 = vmatprep.mubr.bf16.mxu1 %v3125_v12  ;;  %52 = vst.msk [vmem:[%s5015_s1 + $0xa8] sm:$0xff] %vm30_vm0, %v3025_v42  ;;  %53 = vst.msk [vmem:[%s5015_s1 + $0xb0] sm:$0xff] %vm30_vm0, %v3025_v42 }
  0xbf   :  { %1025 = vxpose.xlu0.c.b16.cont [3/8] %v2690_v55, 128  ;;  %1319 = vmatprep.mubr.bf16.mxu0 %v3127_v13  ;;  %54 = vst.msk [vmem:[%s5015_s1 + $0xb8] sm:$0xff] %vm30_vm0, %v3025_v42  ;;  %55 = vst.msk [vmem:[%s5015_s1 + $0xc0] sm:$0xff] %vm30_vm0, %v3025_v42  ;;  %v2728_v55 = vld [vmem:[#allocation2 + $0x24c] ss:$16 sps:$4 sm:$0xff]  }
  0xc0   :  { %v1208_v60 = vpop.trf.xlu1  ;;  %v1080_v61 = vpop.trf.xlu0  ;;  %56 = vst.msk [vmem:[%s5015_s1 + $0xc8] sm:$0xff] %vm30_vm0, %v3025_v42  ;;  %57 = vst.msk [vmem:[%s5015_s1 + $0xd0] sm:$0xff] %vm30_vm0, %v3025_v42 }
  0xc1   :  { %58 = vst.msk [vmem:[%s5015_s1 + $0xd8] sm:$0xff] %vm30_vm0, %v3025_v42  ;;  %59 = vst.msk [vmem:[%s5015_s1 + $0xe0] sm:$0xff] %vm30_vm0, %v3025_v42 }
  0xc2   :  { %1154 = vxpose.xlu1.c.b16.cont [4/8] %v2692_v58, 128  ;;  %60 = vst.msk [vmem:[%s5015_s1 + $0xe8] sm:$0xff] %vm30_vm0, %v3025_v42  ;;  %61 = vst.msk [vmem:[%s5015_s1 + $0xf0] sm:$0xff] %vm30_vm0, %v3025_v42 }
  0xc3   :  { %1026 = vxpose.xlu0.c.b16.cont [4/8] %v2694_v59, 128  ;;  %62 = vst.msk [vmem:[%s5015_s1 + $0xf8] sm:$0xff] %vm30_vm0, %v3025_v42  ;;  %63 = vst.msk [vmem:[%s5015_s1 + $0x100] sm:$0xff] %vm30_vm0, %v3025_v42  ;;  %v2730_v59 = vld [vmem:[#allocation2 + $0x26c] ss:$16 sps:$4 sm:$0xff]  }
  0xc4   :  { %v3143_v0 = vpop.trf.xlu1  ;;  %v3145_v1 = vpop.trf.xlu0  ;;  %64 = vst.msk [vmem:[%s5015_s1 + $0x108] sm:$0xff] %vm30_vm0, %v3025_v42  ;;  %65 = vst.msk [vmem:[%s5015_s1 + $0x110] sm:$0xff] %vm30_vm0, %v3025_v42 }
  0xc5   :  { %1609 = vmatmul.mubr.bf16.gmra.mrb[20].mxu1 %v1132_v44  ;;  %1320 = vmatmul.mubr.bf16.gmra.mrb[20].mxu0 %v1004_v45  ;;  %66 = vst.msk [vmem:[%s5015_s1 + $0x118] sm:$0xff] %vm30_vm0, %v3025_v42  ;;  %67 = vst.msk [vmem:[%s5015_s1 + $0x120] sm:$0xff] %vm30_vm0, %v3025_v42  ;;  %v2725_v44 = vld [vmem:[#allocation2 + $0x1ec] ss:$16 sps:$4 sm:$0xff]  }
  0xc6   :  { %1155 = vxpose.xlu1.c.b16.cont [5/8] %v2696_v62, 128  ;;  %1616 = vmatprep.mubr.bf16.mxu1 %v3129_v16  ;;  %68 = vst.msk [vmem:[%s5015_s1 + $0x128] sm:$0xff] %vm30_vm0, %v3025_v42  ;;  %69 = vst.msk [vmem:[%s5015_s1 + $0x130] sm:$0xff] %vm30_vm0, %v3025_v42 }
  0xc7   :  { %1027 = vxpose.xlu0.c.b16.cont [5/8] %v2698_v63, 128  ;;  %1327 = vmatprep.mubr.bf16.mxu0 %v3131_v17  ;;  %70 = vst.msk [vmem:[%s5015_s1 + $0x138] sm:$0xff] %vm30_vm0, %v3025_v42  ;;  %71 = vst.msk [vmem:[%s5015_s1 + $0x140] sm:$0xff] %vm30_vm0, %v3025_v42  ;;  %v2732_v63 = vld [vmem:[#allocation2 + $0x28c] ss:$16 sps:$4 sm:$0xff]  }
  0xc8   :  { %v3149_v4 = vpop.trf.xlu1  ;;  %v3151_v5 = vpop.trf.xlu0  ;;  %72 = vst.msk [vmem:[%s5015_s1 + $0x148] sm:$0xff] %vm30_vm0, %v3025_v42  ;;  %73 = vst.msk [vmem:[%s5015_s1 + $0x150] sm:$0xff] %vm30_vm0, %v3025_v42 }
  0xc9   :  { %74 = vst.msk [vmem:[%s5015_s1 + $0x158] sm:$0xff] %vm30_vm0, %v3025_v42  ;;  %75 = vst.msk [vmem:[%s5015_s1 + $0x160] sm:$0xff] %vm30_vm0, %v3025_v42 }
  0xca   :  { %1156 = vxpose.xlu1.c.b16.cont [6/8] %v2700_v2, 128  ;;  %76 = vst.msk [vmem:[%s5015_s1 + $0x168] sm:$0xff] %vm30_vm0, %v3025_v42  ;;  %77 = vst.msk [vmem:[%s5015_s1 + $0x170] sm:$0xff] %vm30_vm0, %v3025_v42 }
  0xcb   :  { %1028 = vxpose.xlu0.c.b16.cont [6/8] %v2702_v3, 128  ;;  %78 = vst.msk [vmem:[%s5015_s1 + $0x178] sm:$0xff] %vm30_vm0, %v3025_v42  ;;  %79 = vst.msk [vmem:[%s5015_s1 + $0x180] sm:$0xff] %vm30_vm0, %v3025_v42  ;;  %v2734_v3 = vld [vmem:[#allocation2 + $0x2ac] ss:$16 sps:$4 sm:$0xff]  }
  0xcc   :  { %v3153_v8 = vpop.trf.xlu1  ;;  %v3155_v9 = vpop.trf.xlu0  ;;  %80 = vst.msk [vmem:[%s5015_s1 + $0x188] sm:$0xff] %vm30_vm0, %v3025_v42  ;;  %81 = vst.msk [vmem:[%s5015_s1 + $0x190] sm:$0xff] %vm30_vm0, %v3025_v42 }
  0xcd   :  { %1617 = vmatmul.mubr.bf16.gmra.mrb[24].mxu1 %v1133_v48  ;;  %1328 = vmatmul.mubr.bf16.gmra.mrb[24].mxu0 %v1005_v49  ;;  %82 = vst.msk [vmem:[%s5015_s1 + $0x198] sm:$0xff] %vm30_vm0, %v3025_v42  ;;  %83 = vst.msk [vmem:[%s5015_s1 + $0x1a0] sm:$0xff] %vm30_vm0, %v3025_v42  ;;  %v2683_v48 = vld [vmem:[#allocation2 + $0xc] ss:$16 sps:$4 sm:$0xff]  }
  0xce   :  { %1157 = vxpose.xlu1.c.b16.cont [7/8] %v2704_v6, 128  ;;  %1624 = vmatprep.mubr.bf16.mxu1 %v3133_v20  ;;  %84 = vst.msk [vmem:[%s5015_s1 + $0x1a8] sm:$0xff] %vm30_vm0, %v3025_v42  ;;  %85 = vst.msk [vmem:[%s5015_s1 + $0x1b0] sm:$0xff] %vm30_vm0, %v3025_v42 }
  0xcf   :  { %1029 = vxpose.xlu0.c.b16.cont [7/8] %v2706_v7, 128  ;;  %1335 = vmatprep.mubr.bf16.mxu0 %v3135_v21  ;;  %86 = vst.msk [vmem:[%s5015_s1 + $0x1b8] sm:$0xff] %vm30_vm0, %v3025_v42  ;;  %87 = vst.msk [vmem:[%s5015_s1 + $0x1c0] sm:$0xff] %vm30_vm0, %v3025_v42  ;;  %v2736_v7 = vld [vmem:[#allocation2 + $0x2cc] ss:$16 sps:$4 sm:$0xff]  }
  0xd0   :  { %v3159_v12 = vpop.trf.xlu1  ;;  %v3161_v13 = vpop.trf.xlu0  ;;  %88 = vst.msk [vmem:[%s5015_s1 + $0x1c8] sm:$0xff] %vm30_vm0, %v3025_v42  ;;  %89 = vst.msk [vmem:[%s5015_s1 + $0x1d0] sm:$0xff] %vm30_vm0, %v3025_v42 }
  0xd1   :  { %90 = vst.msk [vmem:[%s5015_s1 + $0x1d8] sm:$0xff] %vm30_vm0, %v3025_v42  ;;  %91 = vst.msk [vmem:[%s5015_s1 + $0x1e0] sm:$0xff] %vm30_vm0, %v3025_v42 }
  0xd2   :  { %1158 = vxpose.xlu1.c.b16.end [8/8] %v2708_v10, 128  ;;  %92 = vst.msk [vmem:[%s5015_s1 + $0x1e8] sm:$0xff] %vm30_vm0, %v3025_v42  ;;  %93 = vst.msk [vmem:[%s5015_s1 + $0x1f0] sm:$0xff] %vm30_vm0, %v3025_v42 }
  0xd3   :  { %1030 = vxpose.xlu0.c.b16.end [8/8] %v2710_v11, 128  ;;  %94 = vst.msk [vmem:[%s5015_s1 + $0x1f8] sm:$0xff] %vm30_vm0, %v3025_v42  ;;  %96 = vst.msk [vmem:[%s5016_s2 + $0x8] sm:$0xff] %vm30_vm0, %v3025_v42  ;;  %v2738_v11 = vld [vmem:[#allocation2 + $0x2ec] ss:$16 sps:$4 sm:$0xff]  }
  0xd4   :  { %v3163_v16 = vpop.trf.xlu1  ;;  %v3165_v17 = vpop.trf.xlu0  ;;  %97 = vst.msk [vmem:[%s5016_s2 + $0x10] sm:$0xff] %vm30_vm0, %v3025_v42  ;;  %98 = vst.msk [vmem:[%s5016_s2 + $0x18] sm:$0xff] %vm30_vm0, %v3025_v42 }
  0xd5   :  { %1625 = vmatmul.mubr.bf16.gmra.mrb[28].mxu1 %v1134_v52  ;;  %1336 = vmatmul.mubr.bf16.gmra.mrb[28].mxu0 %v1006_v53  ;;  %99 = vst.msk [vmem:[%s5016_s2 + $0x20] sm:$0xff] %vm30_vm0, %v3025_v42  ;;  %100 = vst.msk [vmem:[%s5016_s2 + $0x28] sm:$0xff] %vm30_vm0, %v3025_v42  ;;  %v2727_v52 = vld [vmem:[#allocation2 + $0x2c] ss:$16 sps:$4 sm:$0xff]  }
  0xd6   :  { %1231 = vxpose.xlu1.c.b16.start [1/8] %v2646_v14, 128  ;;  %1632 = vmatprep.mubr.bf16.mxu1 %v1207_v56  ;;  %101 = vst.msk [vmem:[%s5016_s2 + $0x30] sm:$0xff] %vm30_vm0, %v3025_v42  ;;  %102 = vst.msk [vmem:[%s5016_s2 + $0x38] sm:$0xff] %vm30_vm0, %v3025_v42  ;;  %v2729_v56 = vld [vmem:[#allocation2 + $0x4c] ss:$16 sps:$4 sm:$0xff]  }
  0xd7   :  { %1103 = vxpose.xlu0.c.b16.start [1/8] %v2649_v15, 128  ;;  %1343 = vmatprep.mubr.bf16.mxu0 %v1079_v57  ;;  %103 = vst.msk [vmem:[%s5016_s2 + $0x40] sm:$0xff] %vm30_vm0, %v3025_v42  ;;  %104 = vst.msk [vmem:[%s5016_s2 + $0x48] sm:$0xff] %vm30_vm0, %v3025_v42 }
  0xd8   :  { %v3167_v20 = vpop.trf.xlu1  ;;  %v3169_v21 = vpop.trf.xlu0  ;;  %105 = vst.msk [vmem:[%s5016_s2 + $0x50] sm:$0xff] %vm30_vm0, %v3025_v42  ;;  %106 = vst.msk [vmem:[%s5016_s2 + $0x58] sm:$0xff] %vm30_vm0, %v3025_v42 }
  0xd9   :  { %107 = vst.msk [vmem:[%s5016_s2 + $0x60] sm:$0xff] %vm30_vm0, %v3025_v42  ;;  %108 = vst.msk [vmem:[%s5016_s2 + $0x68] sm:$0xff] %vm30_vm0, %v3025_v42 }
  0xda   :  { %1232 = vxpose.xlu1.c.b16.cont [2/8] %v2712_v18, 128  ;;  %109 = vst.msk [vmem:[%s5016_s2 + $0x70] sm:$0xff] %vm30_vm0, %v3025_v42  ;;  %110 = vst.msk [vmem:[%s5016_s2 + $0x78] sm:$0xff] %vm30_vm0, %v3025_v42 }
  0xdb   :  { %1104 = vxpose.xlu0.c.b16.cont [2/8] %v2713_v19, 128  ;;  %111 = vst.msk [vmem:[%s5016_s2 + $0x80] sm:$0xff] %vm30_vm0, %v3025_v42  ;;  %112 = vst.msk [vmem:[%s5016_s2 + $0x88] sm:$0xff] %vm30_vm0, %v3025_v42 }
  0xdc   :  { %v1143_v24 = vpop.trf.xlu1  ;;  %v1015_v25 = vpop.trf.xlu0  ;;  %113 = vst.msk [vmem:[%s5016_s2 + $0x90] sm:$0xff] %vm30_vm0, %v3025_v42  ;;  %114 = vst.msk [vmem:[%s5016_s2 + $0x98] sm:$0xff] %vm30_vm0, %v3025_v42 }
  0xdd   :  { %1633 = vmatmul.mubr.bf16.gmra.mrb[32].mxu1 %v1143_v24  ;;  %1344 = vmatmul.mubr.bf16.gmra.mrb[32].mxu0 %v1015_v25  ;;  %115 = vst.msk [vmem:[%s5016_s2 + $0xa0] sm:$0xff] %vm30_vm0, %v3025_v42  ;;  %116 = vst.msk [vmem:[%s5016_s2 + $0xa8] sm:$0xff] %vm30_vm0, %v3025_v42 }
  0xde   :  { %1233 = vxpose.xlu1.c.b16.cont [3/8] %v2714_v22, 128  ;;  %1640 = vmatprep.mubr.bf16.mxu1 %v1208_v60  ;;  %117 = vst.msk [vmem:[%s5016_s2 + $0xb0] sm:$0xff] %vm30_vm0, %v3025_v42  ;;  %118 = vst.msk [vmem:[%s5016_s2 + $0xb8] sm:$0xff] %vm30_vm0, %v3025_v42  ;;  %v2731_v60 = vld [vmem:[#allocation2 + $0x6c] ss:$16 sps:$4 sm:$0xff]  }
  0xdf   :  { %1105 = vxpose.xlu0.c.b16.cont [3/8] %v2715_v23, 128  ;;  %1351 = vmatprep.mubr.bf16.mxu0 %v1080_v61  ;;  %119 = vst.msk [vmem:[%s5016_s2 + $0xc0] sm:$0xff] %vm30_vm0, %v3025_v42  ;;  %120 = vst.msk [vmem:[%s5016_s2 + $0xc8] sm:$0xff] %vm30_vm0, %v3025_v42 }
  0xe0   :  { %v1144_v28 = vpop.trf.xlu1  ;;  %v1016_v29 = vpop.trf.xlu0  ;;  %121 = vst.msk [vmem:[%s5016_s2 + $0xd0] sm:$0xff] %vm30_vm0, %v3025_v42  ;;  %122 = vst.msk [vmem:[%s5016_s2 + $0xd8] sm:$0xff] %vm30_vm0, %v3025_v42 }
  0xe1   :  { %123 = vst.msk [vmem:[%s5016_s2 + $0xe0] sm:$0xff] %vm30_vm0, %v3025_v42  ;;  %124 = vst.msk [vmem:[%s5016_s2 + $0xe8] sm:$0xff] %vm30_vm0, %v3025_v42 }
  0xe2   :  { %1234 = vxpose.xlu1.c.b16.cont [4/8] %v2716_v26, 128  ;;  %125 = vst.msk [vmem:[%s5016_s2 + $0xf0] sm:$0xff] %vm30_vm0, %v3025_v42  ;;  %126 = vst.msk [vmem:[%s5016_s2 + $0xf8] sm:$0xff] %vm30_vm0, %v3025_v42 }
  0xe3   :  { %1106 = vxpose.xlu0.c.b16.cont [4/8] %v2717_v27, 128  ;;  %127 = vst.msk [vmem:[%s5016_s2 + $0x100] sm:$0xff] %vm30_vm0, %v3025_v42  ;;  %128 = vst.msk [vmem:[%s5016_s2 + $0x108] sm:$0xff] %vm30_vm0, %v3025_v42 }
  0xe4   :  { %v1145_v32 = vpop.trf.xlu1  ;;  %v3171_v33 = vpop.trf.xlu0  ;;  %129 = vst.msk [vmem:[%s5016_s2 + $0x110] sm:$0xff] %vm30_vm0, %v3025_v42  ;;  %130 = vst.msk [vmem:[%s5016_s2 + $0x118] sm:$0xff] %vm30_vm0, %v3025_v42 }
  0xe5   :  { %1641 = vmatmul.mubr.bf16.gmra.mrb[36].mxu1 %v1144_v28  ;;  %1352 = vmatmul.mubr.bf16.gmra.mrb[36].mxu0 %v1016_v29  ;;  %131 = vst.msk [vmem:[%s5016_s2 + $0x120] sm:$0xff] %vm30_vm0, %v3025_v42  ;;  %132 = vst.msk [vmem:[%s5016_s2 + $0x128] sm:$0xff] %vm30_vm0, %v3025_v42 }
  0xe6   :  { %1235 = vxpose.xlu1.c.b16.cont [5/8] %v2718_v30, 128  ;;  %1648 = vmatprep.mubr.bf16.mxu1 %v3143_v0  ;;  %133 = vst.msk [vmem:[%s5016_s2 + $0x130] sm:$0xff] %vm30_vm0, %v3025_v42  ;;  %134 = vst.msk [vmem:[%s5016_s2 + $0x138] sm:$0xff] %vm30_vm0, %v3025_v42  ;;  %v2733_v0 = vld [vmem:[#allocation2 + $0x8c] ss:$16 sps:$4 sm:$0xff]  }
  0xe7   :  { %1107 = vxpose.xlu0.c.b16.cont [5/8] %v2719_v31, 128  ;;  %1359 = vmatprep.mubr.bf16.mxu0 %v3145_v1  ;;  %135 = vst.msk [vmem:[%s5016_s2 + $0x140] sm:$0xff] %vm30_vm0, %v3025_v42  ;;  %136 = vst.msk [vmem:[%s5016_s2 + $0x148] sm:$0xff] %vm30_vm0, %v3025_v42 }
  0xe8   :  { %v3175_v36 = vpop.trf.xlu1  ;;  %v3177_v37 = vpop.trf.xlu0  ;;  %137 = vst.msk [vmem:[%s5016_s2 + $0x150] sm:$0xff] %vm30_vm0, %v3025_v42  ;;  %138 = vst.msk [vmem:[%s5016_s2 + $0x158] sm:$0xff] %vm30_vm0, %v3025_v42 }
  0xe9   :  { %139 = vst.msk [vmem:[%s5016_s2 + $0x160] sm:$0xff] %vm30_vm0, %v3025_v42  ;;  %140 = vst.msk [vmem:[%s5016_s2 + $0x168] sm:$0xff] %vm30_vm0, %v3025_v42 }
  0xea   :  { %1236 = vxpose.xlu1.c.b16.cont [6/8] %v2720_v34, 128  ;;  %141 = vst.msk [vmem:[%s5016_s2 + $0x170] sm:$0xff] %vm30_vm0, %v3025_v42  ;;  %142 = vst.msk [vmem:[%s5016_s2 + $0x178] sm:$0xff] %vm30_vm0, %v3025_v42 }
  0xeb   :  { %1108 = vxpose.xlu0.c.b16.cont [6/8] %v2721_v35, 128  ;;  %143 = vst.msk [vmem:[%s5016_s2 + $0x180] sm:$0xff] %vm30_vm0, %v3025_v42  ;;  %144 = vst.msk [vmem:[%s5016_s2 + $0x188] sm:$0xff] %vm30_vm0, %v3025_v42 }
  0xec   :  { %v3183_v40 = vpop.trf.xlu1  ;;  %v3185_v41 = vpop.trf.xlu0  ;;  %145 = vst.msk [vmem:[%s5016_s2 + $0x190] sm:$0xff] %vm30_vm0, %v3025_v42  ;;  %146 = vst.msk [vmem:[%s5016_s2 + $0x198] sm:$0xff] %vm30_vm0, %v3025_v42 }
  0xed   :  { %1649 = vmatmul.mubr.bf16.gmra.mrb[40].mxu1 %v1145_v32  ;;  %147 = vst.msk [vmem:[%s5016_s2 + $0x1a0] sm:$0xff] %vm30_vm0, %v3025_v42  ;;  %148 = vst.msk [vmem:[%s5016_s2 + $0x1a8] sm:$0xff] %vm30_vm0, %v3025_v42  ;;  %1360 = vmatmul.mubr.bf16.gmra.mrb[40].mxu0 %v3171_v33 }
  0xee   :  { %149 = vst.msk [vmem:[%s5016_s2 + $0x1b0] sm:$0xff] %vm30_vm0, %v3025_v42  ;;  %150 = vst.msk [vmem:[%s5016_s2 + $0x1b8] sm:$0xff] %vm30_vm0, %v3025_v42  ;;  %1237 = vxpose.xlu1.c.b16.cont [7/8] %v3179_v38, 128  ;;  %1656 = vmatprep.mubr.bf16.mxu1 %v3149_v4  ;;  %v2735_v4 = vld [vmem:[#allocation2 + $0xac] ss:$16 sps:$4 sm:$0xff]  }
  0xef   :  { %151 = vst.msk [vmem:[%s5016_s2 + $0x1c0] sm:$0xff] %vm30_vm0, %v3025_v42  ;;  %152 = vst.msk [vmem:[%s5016_s2 + $0x1c8] sm:$0xff] %vm30_vm0, %v3025_v42  ;;  %1109 = vxpose.xlu0.c.b16.cont [7/8] %v3181_v39, 128  ;;  %1367 = vmatprep.mubr.bf16.mxu0 %v3151_v5 }
  0xf0   :  { %153 = vst.msk [vmem:[%s5016_s2 + $0x1d0] sm:$0xff] %vm30_vm0, %v3025_v42  ;;  %154 = vst.msk [vmem:[%s5016_s2 + $0x1d8] sm:$0xff] %vm30_vm0, %v3025_v42  ;;  %v1148_v45 = vpop.trf.xlu1  ;;  %v1020_v46 = vpop.trf.xlu0 }
  0xf1   :  { %155 = vst.msk [vmem:[%s5016_s2 + $0x1e0] sm:$0xff] %vm30_vm0, %v3025_v42  ;;  %156 = vst.msk [vmem:[%s5016_s2 + $0x1e8] sm:$0xff] %vm30_vm0, %v3025_v42 }
  0xf2   :  { %157 = vst.msk [vmem:[%s5016_s2 + $0x1f0] sm:$0xff] %vm30_vm0, %v3025_v42  ;;  %158 = vst.msk [vmem:[%s5016_s2 + $0x1f8] sm:$0xff] %vm30_vm0, %v3025_v42  ;;  %1238 = vxpose.xlu1.c.b16.end [8/8] %v2724_v43, 128 }
  0xf3   :  { %1110 = vxpose.xlu0.c.b16.end [8/8] %v2725_v44, 128 }
  0xf4   :  { %v1149_v49 = vpop.trf.xlu1  ;;  %v1021_v50 = vpop.trf.xlu0 }
  0xf5   :  { %1657 = vmatmul.mubr.bf16.gmra.mrb[44].mxu1 %v3175_v36  ;;  %1368 = vmatmul.mubr.bf16.gmra.mrb[44].mxu0 %v3177_v37 }
  0xf6   :  { %1167 = vxpose.xlu1.c.b16.start [1/8] %v2680_v47, 128  ;;  %1664 = vmatprep.mubr.bf16.mxu1 %v3153_v8  ;;  %v2737_v8 = vld [vmem:[#allocation2 + $0xcc] ss:$16 sps:$4 sm:$0xff]  }
  0xf7   :  { %1039 = vxpose.xlu0.c.b16.start [1/8] %v2683_v48, 128  ;;  %1375 = vmatprep.mubr.bf16.mxu0 %v3155_v9 }
  0xf8   :  { %v1150_v53 = vpop.trf.xlu1  ;;  %v1022_v54 = vpop.trf.xlu0 }
  0xfa   :  { %1168 = vxpose.xlu1.c.b16.cont [2/8] %v2726_v51, 128 }
  0xfb   :  { %1040 = vxpose.xlu0.c.b16.cont [2/8] %v2727_v52, 128 }
  0xfc   :  { %v1223_v57 = vpop.trf.xlu1 }
  0xfd   :  { %v1095_v58 = vpop.trf.xlu0  ;;  %1665 = vmatmul.mubr.bf16.gmra.mrb[48].mxu1 %v3183_v40  ;;  %1376 = vmatmul.mubr.bf16.gmra.mrb[48].mxu0 %v3185_v41 }
  0xfe   :  { %1169 = vxpose.xlu1.c.b16.cont [3/8] %v2728_v55, 128  ;;  %1672 = vmatprep.mubr.bf16.mxu1 %v3159_v12  ;;  %v2739_v12 = vld [vmem:[#allocation2 + $0xec] ss:$16 sps:$4 sm:$0xff]  }
  0xff   :  { %1041 = vxpose.xlu0.c.b16.cont [3/8] %v2729_v56, 128  ;;  %1383 = vmatprep.mubr.bf16.mxu0 %v3161_v13 }
 0x100   :  { %v1224_v61 = vpop.trf.xlu1 }
 0x101   :  { %v1096_v62 = vpop.trf.xlu0 }
 0x102   :  { %1170 = vxpose.xlu1.c.b16.cont [4/8] %v2730_v59, 128 }
 0x103   :  { %1042 = vxpose.xlu0.c.b16.cont [4/8] %v2731_v60, 128 }
 0x104   :  { %v1225_v1 = vpop.trf.xlu1 }
 0x105   :  { %v1097_v2 = vpop.trf.xlu0  ;;  %1673 = vmatmul.mubr.bf16.gmra.mrb[52].mxu1 %v1148_v45  ;;  %1384 = vmatmul.mubr.bf16.gmra.mrb[52].mxu0 %v1020_v46 }
 0x106   :  { %1171 = vxpose.xlu1.c.b16.cont [5/8] %v2732_v63, 128  ;;  %1680 = vmatprep.mubr.bf16.mxu1 %v3163_v16 }
 0x107   :  { %1043 = vxpose.xlu0.c.b16.cont [5/8] %v2733_v0, 128  ;;  %1391 = vmatprep.mubr.bf16.mxu0 %v3165_v17 }
 0x108   :  { %v1226_v5 = vpop.trf.xlu1 }
 0x109   :  { %v1098_v6 = vpop.trf.xlu0 }
 0x10a   :  { %1172 = vxpose.xlu1.c.b16.cont [6/8] %v2734_v3, 128  ;;  %v160_v3 = vld [vmem:[%s5016_s2 + $0x8] sm:$0xff] }
 0x10b   :  { %1044 = vxpose.xlu0.c.b16.cont [6/8] %v2735_v4, 128 }
 0x10c   :  { %v1227_v9 = vpop.trf.xlu1 }
 0x10d   :  { %v1099_v10 = vpop.trf.xlu0  ;;  %1681 = vmatmul.mubr.bf16.gmra.mrb[56].mxu1 %v1149_v49  ;;  %1392 = vmatmul.mubr.bf16.gmra.mrb[56].mxu0 %v1021_v50 }
 0x10e   :  { %1173 = vxpose.xlu1.c.b16.cont [7/8] %v2736_v7, 128  ;;  %1688 = vmatprep.mubr.bf16.mxu1 %v3167_v20 }
 0x10f   :  { %1045 = vxpose.xlu0.c.b16.cont [7/8] %v2737_v8, 128  ;;  %1399 = vmatprep.mubr.bf16.mxu0 %v3169_v21 }
 0x110   :  { %v1228_v13 = vpop.trf.xlu1 }
 0x111   :  { %v1100_v14 = vpop.trf.xlu0 }
 0x112   :  { %1174 = vxpose.xlu1.c.b16.end [8/8] %v2738_v11, 128 }
 0x113   :  { %1046 = vxpose.xlu0.c.b16.end [8/8] %v2739_v12, 128 }
 0x114   :  { %v1229_v15 = vpop.trf.xlu1 }
 0x115   :  { %v1101_v16 = vpop.trf.xlu0  ;;  %1689 = vmatmul.mubr.bf16.gmra.mrb[60].mxu1 %v1150_v53  ;;  %1400 = vmatmul.mubr.bf16.gmra.mrb[60].mxu0 %v1022_v54 }
 0x116   :  { %1696 = vmatprep.mubr.bf16.mxu1 %v1223_v57  ;;  %1407 = vmatprep.mubr.bf16.mxu0 %v1095_v58 }
 0x118   :  { %v1230_v17 = vpop.trf.xlu1 }
 0x119   :  { %v1102_v18 = vpop.trf.xlu0 }
 0x11c   :  { %v1159_v19 = vpop.trf.xlu1 }
 0x11d   :  { %v1031_v22 = vpop.trf.xlu0  ;;  %1697 = vmatmul.mubr.bf16.gmra.mrb[64].mxu1 %v1159_v19  ;;  %v162_v19 = vld [vmem:[%s5016_s2 + $0x18] sm:$0xff] }
 0x11e   :  { %1408 = vmatmul.mubr.bf16.gmra.mrb[64].mxu0 %v1031_v22  ;;  %1704 = vmatprep.mubr.bf16.mxu1 %v1224_v61  ;;  %v159_v61 = vld [vmem:[%s5016_s2] sm:$0xff] }
 0x11f   :  { %1415 = vmatprep.mubr.bf16.mxu0 %v1096_v62 }
 0x120   :  { %v1160_v20 = vpop.trf.xlu1 }
 0x121   :  { %v1032_v21 = vpop.trf.xlu0 }
 0x124   :  { %v1161_v23 = vpop.trf.xlu1 }
 0x125   :  { %v1033_v24 = vpop.trf.xlu0  ;;  %1705 = vmatmul.mubr.bf16.gmra.mrb[68].mxu1 %v1160_v20 }
 0x126   :  { %1416 = vmatmul.mubr.bf16.gmra.mrb[68].mxu0 %v1032_v21  ;;  %1712 = vmatprep.mubr.bf16.mxu1 %v1225_v1 }
 0x127   :  { %1423 = vmatprep.mubr.bf16.mxu0 %v1097_v2 }
 0x128   :  { %v1162_v25 = vpop.trf.xlu1 }
 0x129   :  { %v1034_v26 = vpop.trf.xlu0 }
 0x12c   :  { %v1163_v27 = vpop.trf.xlu1 }
 0x12d   :  { %v1035_v28 = vpop.trf.xlu0  ;;  %1713 = vmatmul.mubr.bf16.gmra.mrb[72].mxu1 %v1161_v23 }
 0x12e   :  { %1424 = vmatmul.mubr.bf16.gmra.mrb[72].mxu0 %v1033_v24  ;;  %1720 = vmatprep.mubr.bf16.mxu1 %v1226_v5 }
 0x12f   :  { %1431 = vmatprep.mubr.bf16.mxu0 %v1098_v6 }
 0x130   :  { %v1164_v29 = vpop.trf.xlu1 }
 0x131   :  { %v1036_v30 = vpop.trf.xlu0 }
 0x134   :  { %v1165_v31 = vpop.trf.xlu1 }
 0x135   :  { %v1037_v32 = vpop.trf.xlu0  ;;  %1721 = vmatmul.mubr.bf16.gmra.mrb[76].mxu1 %v1162_v25 }
 0x136   :  { %1432 = vmatmul.mubr.bf16.gmra.mrb[76].mxu0 %v1034_v26  ;;  %1728 = vmatprep.mubr.bf16.mxu1 %v1227_v9 }
 0x137   :  { %1439 = vmatprep.mubr.bf16.mxu0 %v1099_v10 }
 0x138   :  { %v1166_v33 = vpop.trf.xlu1 }
 0x139   :  { %v1038_v34 = vpop.trf.xlu0 }
 0x13c   :  { %v1239_v35 = vpop.trf.xlu1 }
 0x13d   :  { %v1111_v36 = vpop.trf.xlu0  ;;  %1729 = vmatmul.mubr.bf16.gmra.mrb[80].mxu1 %v1163_v27 }
 0x13e   :  { %1440 = vmatmul.mubr.bf16.gmra.mrb[80].mxu0 %v1035_v28  ;;  %1736 = vmatprep.mubr.bf16.mxu1 %v1228_v13  ;;  %v161_v13 = vld [vmem:[%s5016_s2 + $0x10] sm:$0xff] }
 0x13f   :  { %1447 = vmatprep.mubr.bf16.mxu0 %v1100_v14 }
 0x140   :  { %v1240_v37 = vpop.trf.xlu1 }
 0x141   :  { %v1112_v38 = vpop.trf.xlu0 }
 0x144   :  { %v1241_v39 = vpop.trf.xlu1 }
 0x145   :  { %v1113_v40 = vpop.trf.xlu0  ;;  %1737 = vmatmul.mubr.bf16.gmra.mrb[84].mxu1 %v1164_v29 }
 0x146   :  { %1448 = vmatmul.mubr.bf16.gmra.mrb[84].mxu0 %v1036_v30  ;;  %1744 = vmatprep.mubr.bf16.mxu1 %v1229_v15 }
 0x147   :  { %1455 = vmatprep.mubr.bf16.mxu0 %v1101_v16 }
 0x148   :  { %v1242_v41 = vpop.trf.xlu1 }
 0x149   :  { %v1114_v42 = vpop.trf.xlu0 }
 0x14c   :  { %v1243_v43 = vpop.trf.xlu1 }
 0x14d   :  { %v1115_v44 = vpop.trf.xlu0  ;;  %1745 = vmatmul.mubr.bf16.gmra.mrb[88].mxu1 %v1165_v31 }
 0x14e   :  { %1456 = vmatmul.mubr.bf16.gmra.mrb[88].mxu0 %v1037_v32  ;;  %1752 = vmatprep.mubr.bf16.mxu1 %v1230_v17 }
 0x14f   :  { %1463 = vmatprep.mubr.bf16.mxu0 %v1102_v18 }
 0x150   :  { %v3844_v45 = vpop.trf.xlu1 }
 0x151   :  { %v3846_v46 = vpop.trf.xlu0 }
 0x154   :  { %v3848_v47 = vpop.trf.xlu1 }
 0x155   :  { %v3850_v48 = vpop.trf.xlu0  ;;  %1753 = vmatmul.mubr.bf16.gmra.mrb[92].mxu1 %v1166_v33  ;;  %v163_v33 = vld [vmem:[%s5016_s2 + $0x20] sm:$0xff] }
 0x156   :  { %1464 = vmatmul.mubr.bf16.gmra.mrb[92].mxu0 %v1038_v34  ;;  %1760 = vmatprep.mubr.bf16.mxu1 %v1239_v35 }
 0x157   :  { %1471 = vmatprep.mubr.bf16.mxu0 %v1111_v36 }
 0x158   :  { %v3852_v49 = vpop.trf.xlu1 }
 0x159   :  { %v3854_v50 = vpop.trf.xlu0 }
 0x15c   :  { %v1175_v51 = vpop.trf.xlu1 }
 0x15d   :  { %v1047_v52 = vpop.trf.xlu0  ;;  %1761 = vmatmul.mubr.bf16.gmra.mrb[96].mxu1 %v1175_v51 }
 0x15e   :  { %1472 = vmatmul.mubr.bf16.gmra.mrb[96].mxu0 %v1047_v52  ;;  %1768 = vmatprep.mubr.bf16.mxu1 %v1240_v37 }
 0x15f   :  { %1479 = vmatprep.mubr.bf16.mxu0 %v1112_v38 }
 0x160   :  { %v1176_v53 = vpop.trf.xlu1 }
 0x161   :  { %v1048_v54 = vpop.trf.xlu0 }
 0x164   :  { %v1177_v55 = vpop.trf.xlu1 }
 0x165   :  { %1769 = vmatmul.mubr.bf16.gmra.mrb[100].mxu1 %v1176_v53  ;;  %v1049_v56 = vpop.trf.xlu0 }
 0x166   :  { %1480 = vmatmul.mubr.bf16.gmra.mrb[100].mxu0 %v1048_v54  ;;  %1776 = vmatprep.mubr.bf16.mxu1 %v1241_v39  ;;  %v164_v39 = vld [vmem:[%s5016_s2 + $0x28] sm:$0xff] }
 0x167   :  { %1487 = vmatprep.mubr.bf16.mxu0 %v1113_v40 }
 0x168   :  { %v1178_v57 = vpop.trf.xlu1 }
 0x169   :  { %v1050_v59 = vpop.trf.xlu0 }
 0x16c   :  { %v1179_v9 = vpop.trf.xlu1 }
 0x16d   :  { %1777 = vmatmul.mubr.bf16.gmra.mrb[104].mxu1 %v1177_v55  ;;  %v1051_v11 = vpop.trf.xlu0 }
 0x16e   :  { %1488 = vmatmul.mubr.bf16.gmra.mrb[104].mxu0 %v1049_v56  ;;  %1784 = vmatprep.mubr.bf16.mxu1 %v1242_v41 }
 0x16f   :  { %1495 = vmatprep.mubr.bf16.mxu0 %v1114_v42 }
 0x170   :  { %v1570_v58 = vpop.f32.mrb[0].mxu1  ;;  %v1281_v60 = vpop.f32.mrb[0].mxu0 }
 0x171   :  { %v1572_v62 = vpop.f32.mrb[1].mxu1  ;;  %v1571_v63 = vadd.f32 %v1570_v58, %v1281_v60  ;;  %v1283_v0 = vpop.f32.mrb[1].mxu0 }
 0x172   :  { %v1573_v1 = vpop.f32.mrb[2].mxu1  ;;  %v1284_v2 = vpop.f32.mrb[2].mxu0 }
 0x173   :  { %v1575_v4 = vpop.f32.mrb[3].mxu1  ;;  %v1825_v5 = vadd.f32 %v1571_v63, %v159_v61  ;;  %v1574_v6 = vadd.f32 %v1573_v1, %v1284_v2  ;;  %v1286_v7 = vpop.f32.mrb[3].mxu0  ;;  %v166_v63 = vld [vmem:[%s5016_s2 + $0x38] sm:$0xff] }
 0x174   :  { %v1180_v28 = vpop.trf.xlu1  ;;  %v1052_v31 = vpop.trf.xlu0 }
 0x175   :  { %1785 = vmatmul.mubr.bf16.gmra.mrb[108].mxu1 %v1178_v57  ;;  %1890 = vst.msk [vmem:[%s5016_s2] sm:$0xff] %vm30_vm0, %v1825_v5  ;;  %v1826_v8 = vadd.f32 %v1574_v6, %v160_v3 }
 0x176   :  { %1496 = vmatmul.mubr.bf16.gmra.mrb[108].mxu0 %v1050_v59  ;;  %1792 = vmatprep.mubr.bf16.mxu1 %v1243_v43 }
 0x177   :  { %1503 = vmatprep.mubr.bf16.mxu0 %v1115_v44  ;;  %1891 = vst.msk [vmem:[%s5016_s2 + $0x8] sm:$0xff] %vm30_vm0, %v1826_v8 }
 0x178   :  { %v1578_v10 = vpop.f32.mrb[4].mxu1  ;;  %v1289_v12 = vpop.f32.mrb[4].mxu0 }
 0x179   :  { %v1580_v14 = vpop.f32.mrb[5].mxu1  ;;  %v1579_v15 = vadd.f32 %v1578_v10, %v1289_v12  ;;  %v1291_v16 = vpop.f32.mrb[5].mxu0 }
 0x17a   :  { %v1581_v17 = vpop.f32.mrb[6].mxu1  ;;  %v1292_v18 = vpop.f32.mrb[6].mxu0 }
 0x17b   :  { %v1583_v22 = vpop.f32.mrb[7].mxu1  ;;  %v1827_v20 = vadd.f32 %v1579_v15, %v161_v13  ;;  %v1582_v21 = vadd.f32 %v1581_v17, %v1292_v18  ;;  %v1294_v23 = vpop.f32.mrb[7].mxu0 }
 0x17c   :  { %v1957_v24 = vld [vmem:[%s5016_s2] sm:$0xff]  ;;  %v1181_v52 = vpop.trf.xlu1  ;;  %v1053_v55 = vpop.trf.xlu0 }
 0x17d   :  { %1793 = vmatmul.mubr.bf16.gmra.mrb[112].mxu1 %v1179_v9  ;;  %v2021_v25 = vmax.f32 %v1957_v24, 1.0  ;;  %1892 = vst.msk [vmem:[%s5016_s2 + $0x10] sm:$0xff] %vm30_vm0, %v1827_v20  ;;  %v1828_v26 = vadd.f32 %v1582_v21, %v162_v19  ;;  %v168_v20 = vld [vmem:[%s5016_s2 + $0x48] sm:$0xff] }
 0x17e   :  { %1504 = vmatmul.mubr.bf16.gmra.mrb[112].mxu0 %v1051_v11  ;;  %1800 = vmatprep.mubr.bf16.mxu1 %v3844_v45  ;;  %v1958_v27 = vld [vmem:[%s5016_s2 + $0x8] sm:$0xff] }
 0x17f   :  { %1511 = vmatprep.mubr.bf16.mxu0 %v3846_v46  ;;  %2740 = vrsqrt.f32 %v2021_v25  ;;  %v2022_v29 = vmax.f32 %v1958_v27, 1.0  ;;  %1893 = vst.msk [vmem:[%s5016_s2 + $0x18] sm:$0xff] %vm30_vm0, %v1828_v26 }
 0x180   :  { %v1586_v30 = vpop.f32.mrb[8].mxu1  ;;  %2742 = vrcp.f32 %v2021_v25  ;;  %v1297_v32 = vpop.f32.mrb[8].mxu0 }
 0x181   :  { %v1588_v34 = vpop.f32.mrb[9].mxu1  ;;  %2744 = vrsqrt.f32 %v2022_v29  ;;  %v1587_v35 = vadd.f32 %v1586_v30, %v1297_v32  ;;  %v1299_v36 = vpop.f32.mrb[9].mxu0 }
 0x182   :  { %v1589_v37 = vpop.f32.mrb[10].mxu1  ;;  %2746 = vrcp.f32 %v2022_v29  ;;  %v1300_v38 = vpop.f32.mrb[10].mxu0 }
 0x183   :  { %v1591_v40 = vpop.f32.mrb[11].mxu1  ;;  %v1829_v41 = vadd.f32 %v1587_v35, %v163_v33  ;;  %v1590_v42 = vadd.f32 %v1589_v37, %v1300_v38  ;;  %v1302_v43 = vpop.f32.mrb[11].mxu0  ;;  %v169_v35 = vld [vmem:[%s5016_s2 + $0x50] sm:$0xff] }
 0x184   :  { %v1959_v44 = vld [vmem:[%s5016_s2 + $0x10] sm:$0xff]  ;;  %v1182_v10 = vpop.trf.xlu1  ;;  %v1054_v13 = vpop.trf.xlu0  ;;  %v170_v43 = vld [vmem:[%s5016_s2 + $0x58] sm:$0xff] }
 0x185   :  { %1801 = vmatmul.mubr.bf16.gmra.mrb[116].mxu1 %v1180_v28  ;;  %v2023_v45 = vmax.f32 %v1959_v44, 1.0  ;;  %1894 = vst.msk [vmem:[%s5016_s2 + $0x20] sm:$0xff] %vm30_vm0, %v1829_v41  ;;  %v1830_v46 = vadd.f32 %v1590_v42, %v164_v39 }
 0x186   :  { %1512 = vmatmul.mubr.bf16.gmra.mrb[116].mxu0 %v1052_v31  ;;  %1808 = vmatprep.mubr.bf16.mxu1 %v3848_v47  ;;  %v1960_v51 = vld [vmem:[%s5016_s2 + $0x18] sm:$0xff]  ;;  %v165_v47 = vld [vmem:[%s5016_s2 + $0x30] sm:$0xff] }
 0x187   :  { %1519 = vmatprep.mubr.bf16.mxu0 %v3850_v48  ;;  %2748 = vrsqrt.f32 %v2023_v45  ;;  %v2024_v53 = vmax.f32 %v1960_v51, 1.0  ;;  %1895 = vst.msk [vmem:[%s5016_s2 + $0x28] sm:$0xff] %vm30_vm0, %v1830_v46 }
 0x188   :  { %v1594_v54 = vpop.f32.mrb[12].mxu1  ;;  %2750 = vrcp.f32 %v2023_v45  ;;  %v1305_v56 = vpop.f32.mrb[12].mxu0 }
 0x189   :  { %v1596_v57 = vpop.f32.mrb[13].mxu1  ;;  %v2741_v58 = vpop.eup %2740  ;;  %2752 = vrsqrt.f32 %v2024_v53  ;;  %v1595_v48 = vadd.f32 %v1594_v54, %v1305_v56 }
 0x18a   :  { %v1307_v59 = vpop.f32.mrb[13].mxu0  ;;  %v1597_v60 = vpop.f32.mrb[14].mxu1  ;;  %2149 = vst.msk [vmem:[%s5015_s1] sm:$0xff] %vm30_vm0, %v2741_v58  ;;  %2754 = vrcp.f32 %v2024_v53 }
 0x18b   :  { %v2743_v61 = vpop.eup %2742  ;;  %v1308_v62 = vpop.f32.mrb[14].mxu0  ;;  %v1831_v2 = vadd.f32 %v1595_v48, %v165_v47  ;;  %v171_v59 = vld [vmem:[%s5016_s2 + $0x60] sm:$0xff] }
 0x18c   :  { %v1599_v0 = vpop.f32.mrb[15].mxu1  ;;  %v2745_v1 = vpop.eup %2744  ;;  %2341 = vst.msk [vmem:[%s5016_s2] sm:$0xff] %vm30_vm0, %v2743_v61  ;;  %v1598_v3 = vadd.f32 %v1597_v60, %v1308_v62  ;;  %v1961_v6 = vld [vmem:[%s5016_s2 + $0x20] sm:$0xff] }
 0x18d   :  { %v1310_v4 = vpop.f32.mrb[15].mxu0  ;;  %v2747_v5 = vpop.eup %2746  ;;  %2150 = vst.msk [vmem:[%s5015_s1 + $0x8] sm:$0xff] %vm30_vm0, %v2745_v1  ;;  %1809 = vmatmul.mubr.bf16.gmra.mrb[120].mxu1 %v1181_v52  ;;  %v2025_v7 = vmax.f32 %v1961_v6, 1.0  ;;  %1896 = vst.msk [vmem:[%s5016_s2 + $0x30] sm:$0xff] %vm30_vm0, %v1831_v2 }
 0x18e   :  { %2342 = vst.msk [vmem:[%s5016_s2 + $0x8] sm:$0xff] %vm30_vm0, %v2747_v5  ;;  %v1832_v8 = vadd.f32 %v1598_v3, %v166_v63  ;;  %1520 = vmatmul.mubr.bf16.gmra.mrb[120].mxu0 %v1053_v55  ;;  %1816 = vmatprep.mubr.bf16.mxu1 %v3852_v49  ;;  %v1962_v9 = vld [vmem:[%s5016_s2 + $0x28] sm:$0xff]  ;;  %v167_v49 = vld [vmem:[%s5016_s2 + $0x40] sm:$0xff] }
 0x18f   :  { %1527 = vmatprep.mubr.bf16.mxu0 %v3854_v50  ;;  %2756 = vrsqrt.f32 %v2025_v7  ;;  %v2026_v11 = vmax.f32 %v1962_v9, 1.0  ;;  %v172_v3 = vld [vmem:[%s5016_s2 + $0x68] sm:$0xff] }
 0x190   :  { %1897 = vst.msk [vmem:[%s5016_s2 + $0x38] sm:$0xff] %vm30_vm0, %v1832_v8  ;;  %v1602_v12 = vpop.f32.mrb[16].mxu1  ;;  %2758 = vrcp.f32 %v2025_v7  ;;  %v1313_v14 = vpop.f32.mrb[16].mxu0 }
 0x191   :  { %v1604_v15 = vpop.f32.mrb[17].mxu1  ;;  %v2749_v16 = vpop.eup %2748  ;;  %2760 = vrsqrt.f32 %v2026_v11  ;;  %v1603_v50 = vadd.f32 %v1602_v12, %v1313_v14 }
 0x192   :  { %v1315_v17 = vpop.f32.mrb[17].mxu0  ;;  %v1605_v18 = vpop.f32.mrb[18].mxu1  ;;  %2151 = vst.msk [vmem:[%s5015_s1 + $0x10] sm:$0xff] %vm30_vm0, %v2749_v16  ;;  %2762 = vrcp.f32 %v2026_v11  ;;  %v173_v16 = vld [vmem:[%s5016_s2 + $0x70] sm:$0xff] }
 0x193   :  { %v2751_v19 = vpop.eup %2750  ;;  %v1316_v22 = vpop.f32.mrb[18].mxu0  ;;  %v1833_v24 = vadd.f32 %v1603_v50, %v167_v49 }
 0x194   :  { %v1607_v21 = vpop.f32.mrb[19].mxu1  ;;  %v2753_v23 = vpop.eup %2752  ;;  %2343 = vst.msk [vmem:[%s5016_s2 + $0x10] sm:$0xff] %vm30_vm0, %v2751_v19  ;;  %v1606_v25 = vadd.f32 %v1605_v18, %v1316_v22  ;;  %v1963_v28 = vld [vmem:[%s5016_s2 + $0x30] sm:$0xff] }
 0x195   :  { %v1318_v26 = vpop.f32.mrb[19].mxu0  ;;  %v2755_v27 = vpop.eup %2754  ;;  %2152 = vst.msk [vmem:[%s5015_s1 + $0x18] sm:$0xff] %vm30_vm0, %v2753_v23  ;;  %1817 = vmatmul.mubr.bf16.gmra.mrb[124].mxu1 %v1182_v10  ;;  %v2027_v29 = vmax.f32 %v1963_v28, 1.0  ;;  %1898 = vst.msk [vmem:[%s5016_s2 + $0x40] sm:$0xff] %vm30_vm0, %v1833_v24  ;;  %v174_v23 = vld [vmem:[%s5016_s2 + $0x78] sm:$0xff] }
 0x196   :  { %2344 = vst.msk [vmem:[%s5016_s2 + $0x18] sm:$0xff] %vm30_vm0, %v2755_v27  ;;  %v1834_v30 = vadd.f32 %v1606_v25, %v168_v20  ;;  %1528 = vmatmul.mubr.bf16.gmra.mrb[124].mxu0 %v1054_v13 }
 0x197   :  { %v1964_v31 = vld [vmem:[%s5016_s2 + $0x38] sm:$0xff]  ;;  %2764 = vrsqrt.f32 %v2027_v29 }
 0x198   :  { %v2028_v32 = vmax.f32 %v1964_v31, 1.0  ;;  %1899 = vst.msk [vmem:[%s5016_s2 + $0x48] sm:$0xff] %vm30_vm0, %v1834_v30  ;;  %v1610_v33 = vpop.f32.mrb[20].mxu1  ;;  %2766 = vrcp.f32 %v2027_v29  ;;  %v1321_v34 = vpop.f32.mrb[20].mxu0 }
 0x199   :  { %v1612_v36 = vpop.f32.mrb[21].mxu1  ;;  %v2757_v37 = vpop.eup %2756  ;;  %v1611_v38 = vadd.f32 %v1610_v33, %v1321_v34 }
 0x19a   :  { %2768 = vrsqrt.f32 %v2028_v32  ;;  %v1323_v39 = vpop.f32.mrb[21].mxu0  ;;  %v1613_v40 = vpop.f32.mrb[22].mxu1  ;;  %2153 = vst.msk [vmem:[%s5015_s1 + $0x20] sm:$0xff] %vm30_vm0, %v2757_v37  ;;  %v175_v37 = vld [vmem:[%s5016_s2 + $0x80] sm:$0xff] }
 0x19b   :  { %v2759_v41 = vpop.eup %2758  ;;  %2770 = vrcp.f32 %v2028_v32  ;;  %v1324_v42 = vpop.f32.mrb[22].mxu0  ;;  %v1835_v46 = vadd.f32 %v1611_v38, %v169_v35 }
 0x19c   :  { %v1615_v44 = vpop.f32.mrb[23].mxu1  ;;  %v2761_v45 = vpop.eup %2760  ;;  %2345 = vst.msk [vmem:[%s5016_s2 + $0x20] sm:$0xff] %vm30_vm0, %v2759_v41  ;;  %v1614_v51 = vadd.f32 %v1613_v40, %v1324_v42  ;;  %v1965_v54 = vld [vmem:[%s5016_s2 + $0x40] sm:$0xff] }
 0x19d   :  { %v1326_v52 = vpop.f32.mrb[23].mxu0  ;;  %v2763_v53 = vpop.eup %2762  ;;  %2154 = vst.msk [vmem:[%s5015_s1 + $0x28] sm:$0xff] %vm30_vm0, %v2761_v45  ;;  %v2029_v55 = vmax.f32 %v1965_v54, 1.0  ;;  %1900 = vst.msk [vmem:[%s5016_s2 + $0x50] sm:$0xff] %vm30_vm0, %v1835_v46  ;;  %v176_v45 = vld [vmem:[%s5016_s2 + $0x88] sm:$0xff] }
 0x19e   :  { %2346 = vst.msk [vmem:[%s5016_s2 + $0x28] sm:$0xff] %vm30_vm0, %v2763_v53  ;;  %v1836_v56 = vadd.f32 %v1614_v51, %v170_v43 }
 0x19f   :  { %v1966_v47 = vld [vmem:[%s5016_s2 + $0x48] sm:$0xff]  ;;  %2772 = vrsqrt.f32 %v2029_v55 }
 0x1a0   :  { %v2030_v57 = vmax.f32 %v1966_v47, 1.0  ;;  %1901 = vst.msk [vmem:[%s5016_s2 + $0x58] sm:$0xff] %vm30_vm0, %v1836_v56  ;;  %v1618_v58 = vpop.f32.mrb[24].mxu1  ;;  %2774 = vrcp.f32 %v2029_v55  ;;  %v1329_v48 = vpop.f32.mrb[24].mxu0 }
 0x1a1   :  { %v1620_v60 = vpop.f32.mrb[25].mxu1  ;;  %v2765_v61 = vpop.eup %2764  ;;  %v1619_v62 = vadd.f32 %v1618_v58, %v1329_v48 }
 0x1a2   :  { %2776 = vrsqrt.f32 %v2030_v57  ;;  %v1331_v63 = vpop.f32.mrb[25].mxu0  ;;  %v1621_v0 = vpop.f32.mrb[26].mxu1  ;;  %2155 = vst.msk [vmem:[%s5015_s1 + $0x30] sm:$0xff] %vm30_vm0, %v2765_v61  ;;  %v177_v61 = vld [vmem:[%s5016_s2 + $0x90] sm:$0xff] }
 0x1a3   :  { %v2767_v1 = vpop.eup %2766  ;;  %2778 = vrcp.f32 %v2030_v57  ;;  %v1332_v2 = vpop.f32.mrb[26].mxu0  ;;  %v1837_v6 = vadd.f32 %v1619_v62, %v171_v59 }
 0x1a4   :  { %v1623_v4 = vpop.f32.mrb[27].mxu1  ;;  %v2769_v5 = vpop.eup %2768  ;;  %2347 = vst.msk [vmem:[%s5016_s2 + $0x30] sm:$0xff] %vm30_vm0, %v2767_v1  ;;  %v1622_v7 = vadd.f32 %v1621_v0, %v1332_v2  ;;  %v1967_v10 = vld [vmem:[%s5016_s2 + $0x50] sm:$0xff] }
 0x1a5   :  { %v1334_v8 = vpop.f32.mrb[27].mxu0  ;;  %v2771_v9 = vpop.eup %2770  ;;  %2156 = vst.msk [vmem:[%s5015_s1 + $0x38] sm:$0xff] %vm30_vm0, %v2769_v5  ;;  %v2031_v11 = vmax.f32 %v1967_v10, 1.0  ;;  %1902 = vst.msk [vmem:[%s5016_s2 + $0x60] sm:$0xff] %vm30_vm0, %v1837_v6  ;;  %v178_v5 = vld [vmem:[%s5016_s2 + $0x98] sm:$0xff] }
 0x1a6   :  { %2348 = vst.msk [vmem:[%s5016_s2 + $0x38] sm:$0xff] %vm30_vm0, %v2771_v9  ;;  %v1838_v12 = vadd.f32 %v1622_v7, %v172_v3 }
 0x1a7   :  { %v1968_v13 = vld [vmem:[%s5016_s2 + $0x58] sm:$0xff]  ;;  %2780 = vrsqrt.f32 %v2031_v11 }
 0x1a8   :  { %v2032_v14 = vmax.f32 %v1968_v13, 1.0  ;;  %1903 = vst.msk [vmem:[%s5016_s2 + $0x68] sm:$0xff] %vm30_vm0, %v1838_v12  ;;  %v1626_v49 = vpop.f32.mrb[28].mxu1  ;;  %2782 = vrcp.f32 %v2031_v11  ;;  %v1337_v15 = vpop.f32.mrb[28].mxu0 }
 0x1a9   :  { %v1628_v50 = vpop.f32.mrb[29].mxu1  ;;  %v2773_v17 = vpop.eup %2772  ;;  %v1627_v18 = vadd.f32 %v1626_v49, %v1337_v15 }
 0x1aa   :  { %2784 = vrsqrt.f32 %v2032_v14  ;;  %v1339_v19 = vpop.f32.mrb[29].mxu0  ;;  %v1629_v22 = vpop.f32.mrb[30].mxu1  ;;  %2157 = vst.msk [vmem:[%s5015_s1 + $0x40] sm:$0xff] %vm30_vm0, %v2773_v17  ;;  %v179_v17 = vld [vmem:[%s5016_s2 + $0xa0] sm:$0xff] }
 0x1ab   :  { %v2775_v20 = vpop.eup %2774  ;;  %2786 = vrcp.f32 %v2032_v14  ;;  %v1340_v21 = vpop.f32.mrb[30].mxu0  ;;  %v1839_v26 = vadd.f32 %v1627_v18, %v173_v16 }
 0x1ac   :  { %v1631_v24 = vpop.f32.mrb[31].mxu1  ;;  %v2777_v25 = vpop.eup %2776  ;;  %2349 = vst.msk [vmem:[%s5016_s2 + $0x40] sm:$0xff] %vm30_vm0, %v2775_v20  ;;  %v1630_v27 = vadd.f32 %v1629_v22, %v1340_v21  ;;  %v1969_v30 = vld [vmem:[%s5016_s2 + $0x60] sm:$0xff] }
 0x1ad   :  { %v1342_v28 = vpop.f32.mrb[31].mxu0  ;;  %v2779_v29 = vpop.eup %2778  ;;  %2158 = vst.msk [vmem:[%s5015_s1 + $0x48] sm:$0xff] %vm30_vm0, %v2777_v25  ;;  %v2033_v31 = vmax.f32 %v1969_v30, 1.0  ;;  %1904 = vst.msk [vmem:[%s5016_s2 + $0x70] sm:$0xff] %vm30_vm0, %v1839_v26  ;;  %v180_v25 = vld [vmem:[%s5016_s2 + $0xa8] sm:$0xff] }
 0x1ae   :  { %2350 = vst.msk [vmem:[%s5016_s2 + $0x48] sm:$0xff] %vm30_vm0, %v2779_v29  ;;  %v1840_v32 = vadd.f32 %v1630_v27, %v174_v23 }
 0x1af   :  { %v1970_v33 = vld [vmem:[%s5016_s2 + $0x68] sm:$0xff]  ;;  %2788 = vrsqrt.f32 %v2033_v31 }
 0x1b0   :  { %v2034_v34 = vmax.f32 %v1970_v33, 1.0  ;;  %1905 = vst.msk [vmem:[%s5016_s2 + $0x78] sm:$0xff] %vm30_vm0, %v1840_v32  ;;  %v1634_v35 = vpop.f32.mrb[32].mxu1  ;;  %2790 = vrcp.f32 %v2033_v31  ;;  %v1345_v36 = vpop.f32.mrb[32].mxu0 }
 0x1b1   :  { %v1636_v38 = vpop.f32.mrb[33].mxu1  ;;  %v2781_v39 = vpop.eup %2780  ;;  %v1635_v40 = vadd.f32 %v1634_v35, %v1345_v36 }
 0x1b2   :  { %2792 = vrsqrt.f32 %v2034_v34  ;;  %v1347_v41 = vpop.f32.mrb[33].mxu0  ;;  %v1637_v42 = vpop.f32.mrb[34].mxu1  ;;  %2159 = vst.msk [vmem:[%s5015_s1 + $0x50] sm:$0xff] %vm30_vm0, %v2781_v39  ;;  %v181_v39 = vld [vmem:[%s5016_s2 + $0xb0] sm:$0xff] }
 0x1b3   :  { %v2783_v43 = vpop.eup %2782  ;;  %2794 = vrcp.f32 %v2034_v34  ;;  %v1348_v44 = vpop.f32.mrb[34].mxu0  ;;  %v1841_v52 = vadd.f32 %v1635_v40, %v175_v37 }
 0x1b4   :  { %v1639_v46 = vpop.f32.mrb[35].mxu1  ;;  %v2785_v51 = vpop.eup %2784  ;;  %2351 = vst.msk [vmem:[%s5016_s2 + $0x50] sm:$0xff] %vm30_vm0, %v2783_v43  ;;  %v1638_v53 = vadd.f32 %v1637_v42, %v1348_v44  ;;  %v1971_v56 = vld [vmem:[%s5016_s2 + $0x70] sm:$0xff] }
 0x1b5   :  { %v1350_v54 = vpop.f32.mrb[35].mxu0  ;;  %v2787_v55 = vpop.eup %2786  ;;  %2160 = vst.msk [vmem:[%s5015_s1 + $0x58] sm:$0xff] %vm30_vm0, %v2785_v51  ;;  %v2035_v47 = vmax.f32 %v1971_v56, 1.0  ;;  %1906 = vst.msk [vmem:[%s5016_s2 + $0x80] sm:$0xff] %vm30_vm0, %v1841_v52  ;;  %v182_v51 = vld [vmem:[%s5016_s2 + $0xb8] sm:$0xff] }
 0x1b6   :  { %2352 = vst.msk [vmem:[%s5016_s2 + $0x58] sm:$0xff] %vm30_vm0, %v2787_v55  ;;  %v1842_v57 = vadd.f32 %v1638_v53, %v176_v45 }
 0x1b7   :  { %v1972_v58 = vld [vmem:[%s5016_s2 + $0x78] sm:$0xff]  ;;  %2796 = vrsqrt.f32 %v2035_v47 }
 0x1b8   :  { %v2036_v48 = vmax.f32 %v1972_v58, 1.0  ;;  %1907 = vst.msk [vmem:[%s5016_s2 + $0x88] sm:$0xff] %vm30_vm0, %v1842_v57  ;;  %v1642_v59 = vpop.f32.mrb[36].mxu1  ;;  %2798 = vrcp.f32 %v2035_v47  ;;  %v1353_v60 = vpop.f32.mrb[36].mxu0 }
 0x1b9   :  { %v1644_v62 = vpop.f32.mrb[37].mxu1  ;;  %v2789_v63 = vpop.eup %2788  ;;  %v1643_v0 = vadd.f32 %v1642_v59, %v1353_v60 }
 0x1ba   :  { %2800 = vrsqrt.f32 %v2036_v48  ;;  %v1355_v1 = vpop.f32.mrb[37].mxu0  ;;  %v1645_v2 = vpop.f32.mrb[38].mxu1  ;;  %2161 = vst.msk [vmem:[%s5015_s1 + $0x60] sm:$0xff] %vm30_vm0, %v2789_v63  ;;  %v183_v63 = vld [vmem:[%s5016_s2 + $0xc0] sm:$0xff] }
 0x1bb   :  { %v2791_v3 = vpop.eup %2790  ;;  %2802 = vrcp.f32 %v2036_v48  ;;  %v1356_v4 = vpop.f32.mrb[38].mxu0  ;;  %v1843_v8 = vadd.f32 %v1643_v0, %v177_v61 }
 0x1bc   :  { %v1647_v6 = vpop.f32.mrb[39].mxu1  ;;  %v2793_v7 = vpop.eup %2792  ;;  %2353 = vst.msk [vmem:[%s5016_s2 + $0x60] sm:$0xff] %vm30_vm0, %v2791_v3  ;;  %v1646_v9 = vadd.f32 %v1645_v2, %v1356_v4  ;;  %v1973_v12 = vld [vmem:[%s5016_s2 + $0x80] sm:$0xff] }
 0x1bd   :  { %v1358_v10 = vpop.f32.mrb[39].mxu0  ;;  %v2795_v11 = vpop.eup %2794  ;;  %2162 = vst.msk [vmem:[%s5015_s1 + $0x68] sm:$0xff] %vm30_vm0, %v2793_v7  ;;  %v2037_v13 = vmax.f32 %v1973_v12, 1.0  ;;  %1908 = vst.msk [vmem:[%s5016_s2 + $0x90] sm:$0xff] %vm30_vm0, %v1843_v8  ;;  %v184_v7 = vld [vmem:[%s5016_s2 + $0xc8] sm:$0xff] }
 0x1be   :  { %2354 = vst.msk [vmem:[%s5016_s2 + $0x68] sm:$0xff] %vm30_vm0, %v2795_v11  ;;  %v1844_v14 = vadd.f32 %v1646_v9, %v178_v5 }
 0x1bf   :  { %v1974_v49 = vld [vmem:[%s5016_s2 + $0x88] sm:$0xff]  ;;  %2804 = vrsqrt.f32 %v2037_v13 }
 0x1c0   :  { %v2038_v15 = vmax.f32 %v1974_v49, 1.0  ;;  %1909 = vst.msk [vmem:[%s5016_s2 + $0x98] sm:$0xff] %vm30_vm0, %v1844_v14  ;;  %v1650_v16 = vpop.f32.mrb[40].mxu1  ;;  %2806 = vrcp.f32 %v2037_v13  ;;  %v1361_v50 = vpop.f32.mrb[40].mxu0 }
 0x1c1   :  { %v1652_v18 = vpop.f32.mrb[41].mxu1  ;;  %v2797_v19 = vpop.eup %2796  ;;  %v1651_v22 = vadd.f32 %v1650_v16, %v1361_v50 }
 0x1c2   :  { %2808 = vrsqrt.f32 %v2038_v15  ;;  %v1363_v20 = vpop.f32.mrb[41].mxu0  ;;  %v1653_v21 = vpop.f32.mrb[42].mxu1  ;;  %2163 = vst.msk [vmem:[%s5015_s1 + $0x70] sm:$0xff] %vm30_vm0, %v2797_v19  ;;  %v185_v19 = vld [vmem:[%s5016_s2 + $0xd0] sm:$0xff] }
 0x1c3   :  { %v2799_v23 = vpop.eup %2798  ;;  %2810 = vrcp.f32 %v2038_v15  ;;  %v1364_v24 = vpop.f32.mrb[42].mxu0  ;;  %v1845_v28 = vadd.f32 %v1651_v22, %v179_v17 }
 0x1c4   :  { %v1655_v26 = vpop.f32.mrb[43].mxu1  ;;  %v2801_v27 = vpop.eup %2800  ;;  %2355 = vst.msk [vmem:[%s5016_s2 + $0x70] sm:$0xff] %vm30_vm0, %v2799_v23  ;;  %v1654_v29 = vadd.f32 %v1653_v21, %v1364_v24  ;;  %v1975_v32 = vld [vmem:[%s5016_s2 + $0x90] sm:$0xff] }
 0x1c5   :  { %v1366_v30 = vpop.f32.mrb[43].mxu0  ;;  %v2803_v31 = vpop.eup %2802  ;;  %2164 = vst.msk [vmem:[%s5015_s1 + $0x78] sm:$0xff] %vm30_vm0, %v2801_v27  ;;  %v2039_v33 = vmax.f32 %v1975_v32, 1.0  ;;  %1910 = vst.msk [vmem:[%s5016_s2 + $0xa0] sm:$0xff] %vm30_vm0, %v1845_v28  ;;  %v186_v27 = vld [vmem:[%s5016_s2 + $0xd8] sm:$0xff] }
 0x1c6   :  { %2356 = vst.msk [vmem:[%s5016_s2 + $0x78] sm:$0xff] %vm30_vm0, %v2803_v31  ;;  %v1846_v34 = vadd.f32 %v1654_v29, %v180_v25 }
 0x1c7   :  { %v1976_v35 = vld [vmem:[%s5016_s2 + $0x98] sm:$0xff]  ;;  %2812 = vrsqrt.f32 %v2039_v33 }
 0x1c8   :  { %v2040_v36 = vmax.f32 %v1976_v35, 1.0  ;;  %1911 = vst.msk [vmem:[%s5016_s2 + $0xa8] sm:$0xff] %vm30_vm0, %v1846_v34  ;;  %v1658_v37 = vpop.f32.mrb[44].mxu1  ;;  %2814 = vrcp.f32 %v2039_v33  ;;  %v1369_v38 = vpop.f32.mrb[44].mxu0 }
 0x1c9   :  { %v1660_v40 = vpop.f32.mrb[45].mxu1  ;;  %v2805_v41 = vpop.eup %2804  ;;  %v1659_v42 = vadd.f32 %v1658_v37, %v1369_v38 }
 0x1ca   :  { %2816 = vrsqrt.f32 %v2040_v36  ;;  %v1371_v43 = vpop.f32.mrb[45].mxu0  ;;  %v1661_v44 = vpop.f32.mrb[46].mxu1  ;;  %2165 = vst.msk [vmem:[%s5015_s1 + $0x80] sm:$0xff] %vm30_vm0, %v2805_v41  ;;  %v187_v41 = vld [vmem:[%s5016_s2 + $0xe0] sm:$0xff] }
 0x1cb   :  { %v2807_v45 = vpop.eup %2806  ;;  %2818 = vrcp.f32 %v2040_v36  ;;  %v1372_v46 = vpop.f32.mrb[46].mxu0  ;;  %v1847_v54 = vadd.f32 %v1659_v42, %v181_v39 }
 0x1cc   :  { %v1663_v52 = vpop.f32.mrb[47].mxu1  ;;  %v2809_v53 = vpop.eup %2808  ;;  %2357 = vst.msk [vmem:[%s5016_s2 + $0x80] sm:$0xff] %vm30_vm0, %v2807_v45  ;;  %v1662_v55 = vadd.f32 %v1661_v44, %v1372_v46  ;;  %v1977_v57 = vld [vmem:[%s5016_s2 + $0xa0] sm:$0xff] }
 0x1cd   :  { %v1374_v56 = vpop.f32.mrb[47].mxu0  ;;  %v2811_v47 = vpop.eup %2810  ;;  %2166 = vst.msk [vmem:[%s5015_s1 + $0x88] sm:$0xff] %vm30_vm0, %v2809_v53  ;;  %v2041_v58 = vmax.f32 %v1977_v57, 1.0  ;;  %1912 = vst.msk [vmem:[%s5016_s2 + $0xb0] sm:$0xff] %vm30_vm0, %v1847_v54  ;;  %v188_v53 = vld [vmem:[%s5016_s2 + $0xe8] sm:$0xff] }
 0x1ce   :  { %2358 = vst.msk [vmem:[%s5016_s2 + $0x88] sm:$0xff] %vm30_vm0, %v2811_v47  ;;  %v1848_v48 = vadd.f32 %v1662_v55, %v182_v51 }
 0x1cf   :  { %v1978_v59 = vld [vmem:[%s5016_s2 + $0xa8] sm:$0xff]  ;;  %2820 = vrsqrt.f32 %v2041_v58 }
 0x1d0   :  { %v2042_v60 = vmax.f32 %v1978_v59, 1.0  ;;  %1913 = vst.msk [vmem:[%s5016_s2 + $0xb8] sm:$0xff] %vm30_vm0, %v1848_v48  ;;  %v1666_v61 = vpop.f32.mrb[48].mxu1  ;;  %2822 = vrcp.f32 %v2041_v58  ;;  %v1377_v62 = vpop.f32.mrb[48].mxu0 }
 0x1d1   :  { %v1668_v0 = vpop.f32.mrb[49].mxu1  ;;  %v2813_v1 = vpop.eup %2812  ;;  %v1667_v2 = vadd.f32 %v1666_v61, %v1377_v62 }
 0x1d2   :  { %2824 = vrsqrt.f32 %v2042_v60  ;;  %v1379_v3 = vpop.f32.mrb[49].mxu0  ;;  %v1669_v4 = vpop.f32.mrb[50].mxu1  ;;  %2167 = vst.msk [vmem:[%s5015_s1 + $0x90] sm:$0xff] %vm30_vm0, %v2813_v1  ;;  %v189_v1 = vld [vmem:[%s5016_s2 + $0xf0] sm:$0xff] }
 0x1d3   :  { %v2815_v5 = vpop.eup %2814  ;;  %2826 = vrcp.f32 %v2042_v60  ;;  %v1380_v6 = vpop.f32.mrb[50].mxu0  ;;  %v1849_v10 = vadd.f32 %v1667_v2, %v183_v63 }
 0x1d4   :  { %v1671_v8 = vpop.f32.mrb[51].mxu1  ;;  %v2817_v9 = vpop.eup %2816  ;;  %2359 = vst.msk [vmem:[%s5016_s2 + $0x90] sm:$0xff] %vm30_vm0, %v2815_v5  ;;  %v1670_v11 = vadd.f32 %v1669_v4, %v1380_v6  ;;  %v1979_v14 = vld [vmem:[%s5016_s2 + $0xb0] sm:$0xff] }
 0x1d5   :  { %v1382_v12 = vpop.f32.mrb[51].mxu0  ;;  %v2819_v13 = vpop.eup %2818  ;;  %2168 = vst.msk [vmem:[%s5015_s1 + $0x98] sm:$0xff] %vm30_vm0, %v2817_v9  ;;  %v2043_v49 = vmax.f32 %v1979_v14, 1.0  ;;  %1914 = vst.msk [vmem:[%s5016_s2 + $0xc0] sm:$0xff] %vm30_vm0, %v1849_v10  ;;  %v190_v9 = vld [vmem:[%s5016_s2 + $0xf8] sm:$0xff] }
 0x1d6   :  { %2360 = vst.msk [vmem:[%s5016_s2 + $0x98] sm:$0xff] %vm30_vm0, %v2819_v13  ;;  %v1850_v15 = vadd.f32 %v1670_v11, %v184_v7 }
 0x1d7   :  { %v1980_v16 = vld [vmem:[%s5016_s2 + $0xb8] sm:$0xff]  ;;  %2828 = vrsqrt.f32 %v2043_v49 }
 0x1d8   :  { %v2044_v50 = vmax.f32 %v1980_v16, 1.0  ;;  %1915 = vst.msk [vmem:[%s5016_s2 + $0xc8] sm:$0xff] %vm30_vm0, %v1850_v15  ;;  %v1674_v17 = vpop.f32.mrb[52].mxu1  ;;  %2830 = vrcp.f32 %v2043_v49  ;;  %v1385_v18 = vpop.f32.mrb[52].mxu0 }
 0x1d9   :  { %v1676_v22 = vpop.f32.mrb[53].mxu1  ;;  %v2821_v20 = vpop.eup %2820  ;;  %v1675_v21 = vadd.f32 %v1674_v17, %v1385_v18 }
 0x1da   :  { %2832 = vrsqrt.f32 %v2044_v50  ;;  %v1387_v23 = vpop.f32.mrb[53].mxu0  ;;  %v1677_v24 = vpop.f32.mrb[54].mxu1  ;;  %2169 = vst.msk [vmem:[%s5015_s1 + $0xa0] sm:$0xff] %vm30_vm0, %v2821_v20  ;;  %v191_v20 = vld [vmem:[%s5016_s2 + $0x100] sm:$0xff] }
 0x1db   :  { %v2823_v25 = vpop.eup %2822  ;;  %2834 = vrcp.f32 %v2044_v50  ;;  %v1388_v26 = vpop.f32.mrb[54].mxu0  ;;  %v1851_v30 = vadd.f32 %v1675_v21, %v185_v19 }
 0x1dc   :  { %v1679_v28 = vpop.f32.mrb[55].mxu1  ;;  %v2825_v29 = vpop.eup %2824  ;;  %2361 = vst.msk [vmem:[%s5016_s2 + $0xa0] sm:$0xff] %vm30_vm0, %v2823_v25  ;;  %v1678_v31 = vadd.f32 %v1677_v24, %v1388_v26  ;;  %v1981_v34 = vld [vmem:[%s5016_s2 + $0xc0] sm:$0xff] }
 0x1dd   :  { %v1390_v32 = vpop.f32.mrb[55].mxu0  ;;  %v2827_v33 = vpop.eup %2826  ;;  %2170 = vst.msk [vmem:[%s5015_s1 + $0xa8] sm:$0xff] %vm30_vm0, %v2825_v29  ;;  %v2045_v35 = vmax.f32 %v1981_v34, 1.0  ;;  %1916 = vst.msk [vmem:[%s5016_s2 + $0xd0] sm:$0xff] %vm30_vm0, %v1851_v30  ;;  %v192_v29 = vld [vmem:[%s5016_s2 + $0x108] sm:$0xff] }
 0x1de   :  { %2362 = vst.msk [vmem:[%s5016_s2 + $0xa8] sm:$0xff] %vm30_vm0, %v2827_v33  ;;  %v1852_v36 = vadd.f32 %v1678_v31, %v186_v27 }
 0x1df   :  { %v1982_v37 = vld [vmem:[%s5016_s2 + $0xc8] sm:$0xff]  ;;  %2836 = vrsqrt.f32 %v2045_v35 }
 0x1e0   :  { %v2046_v38 = vmax.f32 %v1982_v37, 1.0  ;;  %1917 = vst.msk [vmem:[%s5016_s2 + $0xd8] sm:$0xff] %vm30_vm0, %v1852_v36  ;;  %v1682_v39 = vpop.f32.mrb[56].mxu1  ;;  %2838 = vrcp.f32 %v2045_v35  ;;  %v1393_v40 = vpop.f32.mrb[56].mxu0 }
 0x1e1   :  { %v1684_v42 = vpop.f32.mrb[57].mxu1  ;;  %v2829_v43 = vpop.eup %2828  ;;  %v1683_v44 = vadd.f32 %v1682_v39, %v1393_v40 }
 0x1e2   :  { %2840 = vrsqrt.f32 %v2046_v38  ;;  %v1395_v45 = vpop.f32.mrb[57].mxu0  ;;  %v1685_v46 = vpop.f32.mrb[58].mxu1  ;;  %2171 = vst.msk [vmem:[%s5015_s1 + $0xb0] sm:$0xff] %vm30_vm0, %v2829_v43  ;;  %v193_v43 = vld [vmem:[%s5016_s2 + $0x110] sm:$0xff] }
 0x1e3   :  { %v2831_v51 = vpop.eup %2830  ;;  %2842 = vrcp.f32 %v2046_v38  ;;  %v1396_v52 = vpop.f32.mrb[58].mxu0  ;;  %v1853_v56 = vadd.f32 %v1683_v44, %v187_v41 }
 0x1e4   :  { %v1687_v54 = vpop.f32.mrb[59].mxu1  ;;  %v2833_v55 = vpop.eup %2832  ;;  %2363 = vst.msk [vmem:[%s5016_s2 + $0xb0] sm:$0xff] %vm30_vm0, %v2831_v51  ;;  %v1686_v47 = vadd.f32 %v1685_v46, %v1396_v52  ;;  %v1983_v48 = vld [vmem:[%s5016_s2 + $0xd0] sm:$0xff] }
 0x1e5   :  { %v1398_v57 = vpop.f32.mrb[59].mxu0  ;;  %v2835_v58 = vpop.eup %2834  ;;  %2172 = vst.msk [vmem:[%s5015_s1 + $0xb8] sm:$0xff] %vm30_vm0, %v2833_v55  ;;  %v2047_v59 = vmax.f32 %v1983_v48, 1.0  ;;  %1918 = vst.msk [vmem:[%s5016_s2 + $0xe0] sm:$0xff] %vm30_vm0, %v1853_v56  ;;  %v194_v55 = vld [vmem:[%s5016_s2 + $0x118] sm:$0xff] }
 0x1e6   :  { %2364 = vst.msk [vmem:[%s5016_s2 + $0xb8] sm:$0xff] %vm30_vm0, %v2835_v58  ;;  %v1854_v60 = vadd.f32 %v1686_v47, %v188_v53 }
 0x1e7   :  { %v1984_v61 = vld [vmem:[%s5016_s2 + $0xd8] sm:$0xff]  ;;  %2844 = vrsqrt.f32 %v2047_v59 }
 0x1e8   :  { %v2048_v62 = vmax.f32 %v1984_v61, 1.0  ;;  %1919 = vst.msk [vmem:[%s5016_s2 + $0xe8] sm:$0xff] %vm30_vm0, %v1854_v60  ;;  %v1690_v63 = vpop.f32.mrb[60].mxu1  ;;  %2846 = vrcp.f32 %v2047_v59  ;;  %v1401_v0 = vpop.f32.mrb[60].mxu0 }
 0x1e9   :  { %v1692_v2 = vpop.f32.mrb[61].mxu1  ;;  %v2837_v3 = vpop.eup %2836  ;;  %v1691_v4 = vadd.f32 %v1690_v63, %v1401_v0 }
 0x1ea   :  { %2848 = vrsqrt.f32 %v2048_v62  ;;  %v1403_v5 = vpop.f32.mrb[61].mxu0  ;;  %v1693_v6 = vpop.f32.mrb[62].mxu1  ;;  %2173 = vst.msk [vmem:[%s5015_s1 + $0xc0] sm:$0xff] %vm30_vm0, %v2837_v3  ;;  %v195_v3 = vld [vmem:[%s5016_s2 + $0x120] sm:$0xff] }
 0x1eb   :  { %v2839_v7 = vpop.eup %2838  ;;  %2850 = vrcp.f32 %v2048_v62  ;;  %v1404_v8 = vpop.f32.mrb[62].mxu0  ;;  %v1855_v12 = vadd.f32 %v1691_v4, %v189_v1 }
 0x1ec   :  { %v1695_v10 = vpop.f32.mrb[63].mxu1  ;;  %v2841_v11 = vpop.eup %2840  ;;  %2365 = vst.msk [vmem:[%s5016_s2 + $0xc0] sm:$0xff] %vm30_vm0, %v2839_v7  ;;  %v1694_v13 = vadd.f32 %v1693_v6, %v1404_v8  ;;  %v1985_v15 = vld [vmem:[%s5016_s2 + $0xe0] sm:$0xff] }
 0x1ed   :  { %v1406_v14 = vpop.f32.mrb[63].mxu0  ;;  %v2843_v49 = vpop.eup %2842  ;;  %2174 = vst.msk [vmem:[%s5015_s1 + $0xc8] sm:$0xff] %vm30_vm0, %v2841_v11  ;;  %v2049_v16 = vmax.f32 %v1985_v15, 1.0  ;;  %1920 = vst.msk [vmem:[%s5016_s2 + $0xf0] sm:$0xff] %vm30_vm0, %v1855_v12  ;;  %v196_v11 = vld [vmem:[%s5016_s2 + $0x128] sm:$0xff] }
 0x1ee   :  { %2366 = vst.msk [vmem:[%s5016_s2 + $0xc8] sm:$0xff] %vm30_vm0, %v2843_v49  ;;  %v1856_v50 = vadd.f32 %v1694_v13, %v190_v9 }
 0x1ef   :  { %v1986_v17 = vld [vmem:[%s5016_s2 + $0xe8] sm:$0xff]  ;;  %2852 = vrsqrt.f32 %v2049_v16 }
 0x1f0   :  { %v2050_v18 = vmax.f32 %v1986_v17, 1.0  ;;  %1921 = vst.msk [vmem:[%s5016_s2 + $0xf8] sm:$0xff] %vm30_vm0, %v1856_v50  ;;  %v1698_v19 = vpop.f32.mrb[64].mxu1  ;;  %2854 = vrcp.f32 %v2049_v16 }
 0x1f1   :  { %v1409_v22 = vpop.f32.mrb[64].mxu0  ;;  %v1700_v21 = vpop.f32.mrb[65].mxu1 }
 0x1f2   :  { %v2845_v23 = vpop.eup %2844  ;;  %2856 = vrsqrt.f32 %v2050_v18  ;;  %v1699_v24 = vadd.f32 %v1698_v19, %v1409_v22  ;;  %v1411_v25 = vpop.f32.mrb[65].mxu0 }
 0x1f3   :  { %v1701_v26 = vpop.f32.mrb[66].mxu1  ;;  %v2847_v27 = vpop.eup %2846  ;;  %2175 = vst.msk [vmem:[%s5015_s1 + $0xd0] sm:$0xff] %vm30_vm0, %v2845_v23  ;;  %2858 = vrcp.f32 %v2050_v18  ;;  %v197_v23 = vld [vmem:[%s5016_s2 + $0x130] sm:$0xff] }
 0x1f4   :  { %v1412_v28 = vpop.f32.mrb[66].mxu0  ;;  %v1703_v30 = vpop.f32.mrb[67].mxu1  ;;  %2367 = vst.msk [vmem:[%s5016_s2 + $0xd0] sm:$0xff] %vm30_vm0, %v2847_v27  ;;  %v1857_v32 = vadd.f32 %v1699_v24, %v191_v20  ;;  %v1987_v36 = vld [vmem:[%s5016_s2 + $0xf0] sm:$0xff] }
 0x1f5   :  { %v2849_v31 = vpop.eup %2848  ;;  %v1702_v33 = vadd.f32 %v1701_v26, %v1412_v28  ;;  %v1414_v34 = vpop.f32.mrb[67].mxu0  ;;  %v2051_v37 = vmax.f32 %v1987_v36, 1.0 }
 0x1f6   :  { %v2851_v35 = vpop.eup %2850  ;;  %2176 = vst.msk [vmem:[%s5015_s1 + $0xd8] sm:$0xff] %vm30_vm0, %v2849_v31  ;;  %1922 = vst.msk [vmem:[%s5016_s2 + $0x100] sm:$0xff] %vm30_vm0, %v1857_v32  ;;  %v198_v31 = vld [vmem:[%s5016_s2 + $0x138] sm:$0xff] }
 0x1f7   :  { %2368 = vst.msk [vmem:[%s5016_s2 + $0xd8] sm:$0xff] %vm30_vm0, %v2851_v35  ;;  %v1858_v38 = vadd.f32 %v1702_v33, %v192_v29  ;;  %v1988_v39 = vld [vmem:[%s5016_s2 + $0xf8] sm:$0xff]  ;;  %2860 = vrsqrt.f32 %v2051_v37 }
 0x1f8   :  { %v2052_v40 = vmax.f32 %v1988_v39, 1.0  ;;  %v1706_v41 = vpop.f32.mrb[68].mxu1  ;;  %2862 = vrcp.f32 %v2051_v37 }
 0x1f9   :  { %1923 = vst.msk [vmem:[%s5016_s2 + $0x108] sm:$0xff] %vm30_vm0, %v1858_v38  ;;  %v1417_v42 = vpop.f32.mrb[68].mxu0  ;;  %v1708_v44 = vpop.f32.mrb[69].mxu1 }
 0x1fa   :  { %v2853_v45 = vpop.eup %2852  ;;  %2864 = vrsqrt.f32 %v2052_v40  ;;  %v1707_v46 = vadd.f32 %v1706_v41, %v1417_v42  ;;  %v1419_v51 = vpop.f32.mrb[69].mxu0 }
 0x1fb   :  { %v1709_v52 = vpop.f32.mrb[70].mxu1  ;;  %v2855_v53 = vpop.eup %2854  ;;  %2177 = vst.msk [vmem:[%s5015_s1 + $0xe0] sm:$0xff] %vm30_vm0, %v2853_v45  ;;  %2866 = vrcp.f32 %v2052_v40  ;;  %v199_v45 = vld [vmem:[%s5016_s2 + $0x140] sm:$0xff] }
 0x1fc   :  { %v1420_v54 = vpop.f32.mrb[70].mxu0  ;;  %v1711_v56 = vpop.f32.mrb[71].mxu1  ;;  %2369 = vst.msk [vmem:[%s5016_s2 + $0xe0] sm:$0xff] %vm30_vm0, %v2855_v53  ;;  %v1859_v57 = vadd.f32 %v1707_v46, %v193_v43 }
 0x1fd   :  { %v2857_v47 = vpop.eup %2856  ;;  %v1710_v58 = vadd.f32 %v1709_v52, %v1420_v54  ;;  %v1422_v48 = vpop.f32.mrb[71].mxu0  ;;  %v1989_v60 = vld [vmem:[%s5016_s2 + $0x100] sm:$0xff] }
 0x1fe   :  { %v2859_v59 = vpop.eup %2858  ;;  %2178 = vst.msk [vmem:[%s5015_s1 + $0xe8] sm:$0xff] %vm30_vm0, %v2857_v47  ;;  %v2053_v61 = vmax.f32 %v1989_v60, 1.0  ;;  %1924 = vst.msk [vmem:[%s5016_s2 + $0x110] sm:$0xff] %vm30_vm0, %v1859_v57  ;;  %v200_v47 = vld [vmem:[%s5016_s2 + $0x148] sm:$0xff] }
 0x1ff   :  { %2370 = vst.msk [vmem:[%s5016_s2 + $0xe8] sm:$0xff] %vm30_vm0, %v2859_v59  ;;  %v1860_v62 = vadd.f32 %v1710_v58, %v194_v55 }
 0x200   :  { %v1990_v63 = vld [vmem:[%s5016_s2 + $0x108] sm:$0xff]  ;;  %2868 = vrsqrt.f32 %v2053_v61  ;;  %v1714_v1 = vpop.f32.mrb[72].mxu1 }
 0x201   :  { %v2054_v0 = vmax.f32 %v1990_v63, 1.0  ;;  %1925 = vst.msk [vmem:[%s5016_s2 + $0x118] sm:$0xff] %vm30_vm0, %v1860_v62  ;;  %2870 = vrcp.f32 %v2053_v61  ;;  %v1425_v2 = vpop.f32.mrb[72].mxu0  ;;  %v1716_v4 = vpop.f32.mrb[73].mxu1 }
 0x202   :  { %v2861_v5 = vpop.eup %2860  ;;  %v1715_v6 = vadd.f32 %v1714_v1, %v1425_v2  ;;  %v1427_v7 = vpop.f32.mrb[73].mxu0 }
 0x203   :  { %2872 = vrsqrt.f32 %v2054_v0  ;;  %v1717_v8 = vpop.f32.mrb[74].mxu1  ;;  %v2863_v9 = vpop.eup %2862  ;;  %2179 = vst.msk [vmem:[%s5015_s1 + $0xf0] sm:$0xff] %vm30_vm0, %v2861_v5  ;;  %v201_v5 = vld [vmem:[%s5016_s2 + $0x150] sm:$0xff] }
 0x204   :  { %2874 = vrcp.f32 %v2054_v0  ;;  %v1428_v10 = vpop.f32.mrb[74].mxu0  ;;  %v1719_v12 = vpop.f32.mrb[75].mxu1  ;;  %2371 = vst.msk [vmem:[%s5016_s2 + $0xf0] sm:$0xff] %vm30_vm0, %v2863_v9  ;;  %v1861_v14 = vadd.f32 %v1715_v6, %v195_v3 }
 0x205   :  { %v2865_v13 = vpop.eup %2864  ;;  %v1718_v49 = vadd.f32 %v1717_v8, %v1428_v10  ;;  %v1430_v15 = vpop.f32.mrb[75].mxu0  ;;  %v1991_v50 = vld [vmem:[%s5016_s2 + $0x110] sm:$0xff] }
 0x206   :  { %v2867_v16 = vpop.eup %2866  ;;  %2180 = vst.msk [vmem:[%s5015_s1 + $0xf8] sm:$0xff] %vm30_vm0, %v2865_v13  ;;  %v2055_v17 = vmax.f32 %v1991_v50, 1.0  ;;  %1926 = vst.msk [vmem:[%s5016_s2 + $0x120] sm:$0xff] %vm30_vm0, %v1861_v14  ;;  %v202_v13 = vld [vmem:[%s5016_s2 + $0x158] sm:$0xff] }
 0x207   :  { %2372 = vst.msk [vmem:[%s5016_s2 + $0xf8] sm:$0xff] %vm30_vm0, %v2867_v16  ;;  %v1862_v18 = vadd.f32 %v1718_v49, %v196_v11 }
 0x208   :  { %v1992_v19 = vld [vmem:[%s5016_s2 + $0x118] sm:$0xff]  ;;  %2876 = vrsqrt.f32 %v2055_v17  ;;  %v1722_v20 = vpop.f32.mrb[76].mxu1 }
 0x209   :  { %v2056_v22 = vmax.f32 %v1992_v19, 1.0  ;;  %1927 = vst.msk [vmem:[%s5016_s2 + $0x128] sm:$0xff] %vm30_vm0, %v1862_v18  ;;  %2878 = vrcp.f32 %v2055_v17  ;;  %v1433_v21 = vpop.f32.mrb[76].mxu0  ;;  %v1724_v24 = vpop.f32.mrb[77].mxu1 }
 0x20a   :  { %v2869_v25 = vpop.eup %2868  ;;  %v1723_v26 = vadd.f32 %v1722_v20, %v1433_v21  ;;  %v1435_v27 = vpop.f32.mrb[77].mxu0 }
 0x20b   :  { %2880 = vrsqrt.f32 %v2056_v22  ;;  %v1725_v28 = vpop.f32.mrb[78].mxu1  ;;  %v2871_v29 = vpop.eup %2870  ;;  %2181 = vst.msk [vmem:[%s5015_s1 + $0x100] sm:$0xff] %vm30_vm0, %v2869_v25  ;;  %v203_v25 = vld [vmem:[%s5016_s2 + $0x160] sm:$0xff] }
 0x20c   :  { %2882 = vrcp.f32 %v2056_v22  ;;  %v1436_v30 = vpop.f32.mrb[78].mxu0  ;;  %v1727_v32 = vpop.f32.mrb[79].mxu1  ;;  %2373 = vst.msk [vmem:[%s5016_s2 + $0x100] sm:$0xff] %vm30_vm0, %v2871_v29  ;;  %v1863_v34 = vadd.f32 %v1723_v26, %v197_v23 }
 0x20d   :  { %v2873_v33 = vpop.eup %2872  ;;  %v1726_v35 = vadd.f32 %v1725_v28, %v1436_v30  ;;  %v1438_v36 = vpop.f32.mrb[79].mxu0  ;;  %v1993_v38 = vld [vmem:[%s5016_s2 + $0x120] sm:$0xff] }
 0x20e   :  { %v2875_v37 = vpop.eup %2874  ;;  %2182 = vst.msk [vmem:[%s5015_s1 + $0x108] sm:$0xff] %vm30_vm0, %v2873_v33  ;;  %v2057_v39 = vmax.f32 %v1993_v38, 1.0  ;;  %1928 = vst.msk [vmem:[%s5016_s2 + $0x130] sm:$0xff] %vm30_vm0, %v1863_v34  ;;  %v204_v33 = vld [vmem:[%s5016_s2 + $0x168] sm:$0xff] }
 0x20f   :  { %2374 = vst.msk [vmem:[%s5016_s2 + $0x108] sm:$0xff] %vm30_vm0, %v2875_v37  ;;  %v1864_v40 = vadd.f32 %v1726_v35, %v198_v31 }
 0x210   :  { %v1994_v41 = vld [vmem:[%s5016_s2 + $0x128] sm:$0xff]  ;;  %2884 = vrsqrt.f32 %v2057_v39  ;;  %v1730_v43 = vpop.f32.mrb[80].mxu1 }
 0x211   :  { %v2058_v42 = vmax.f32 %v1994_v41, 1.0  ;;  %1929 = vst.msk [vmem:[%s5016_s2 + $0x138] sm:$0xff] %vm30_vm0, %v1864_v40  ;;  %2886 = vrcp.f32 %v2057_v39  ;;  %v1441_v44 = vpop.f32.mrb[80].mxu0  ;;  %v1732_v46 = vpop.f32.mrb[81].mxu1 }
 0x212   :  { %v2877_v51 = vpop.eup %2876  ;;  %v1731_v52 = vadd.f32 %v1730_v43, %v1441_v44  ;;  %v1443_v53 = vpop.f32.mrb[81].mxu0 }
 0x213   :  { %2888 = vrsqrt.f32 %v2058_v42  ;;  %v1733_v54 = vpop.f32.mrb[82].mxu1  ;;  %v2879_v55 = vpop.eup %2878  ;;  %2183 = vst.msk [vmem:[%s5015_s1 + $0x110] sm:$0xff] %vm30_vm0, %v2877_v51  ;;  %v205_v51 = vld [vmem:[%s5016_s2 + $0x170] sm:$0xff] }
 0x214   :  { %2890 = vrcp.f32 %v2058_v42  ;;  %v1444_v56 = vpop.f32.mrb[82].mxu0  ;;  %v1735_v57 = vpop.f32.mrb[83].mxu1  ;;  %2375 = vst.msk [vmem:[%s5016_s2 + $0x110] sm:$0xff] %vm30_vm0, %v2879_v55  ;;  %v1865_v48 = vadd.f32 %v1731_v52, %v199_v45 }
 0x215   :  { %v2881_v58 = vpop.eup %2880  ;;  %v1734_v59 = vadd.f32 %v1733_v54, %v1444_v56  ;;  %v1446_v60 = vpop.f32.mrb[83].mxu0  ;;  %v1995_v62 = vld [vmem:[%s5016_s2 + $0x130] sm:$0xff] }
 0x216   :  { %v2883_v61 = vpop.eup %2882  ;;  %2184 = vst.msk [vmem:[%s5015_s1 + $0x118] sm:$0xff] %vm30_vm0, %v2881_v58  ;;  %v2059_v63 = vmax.f32 %v1995_v62, 1.0  ;;  %1930 = vst.msk [vmem:[%s5016_s2 + $0x140] sm:$0xff] %vm30_vm0, %v1865_v48  ;;  %v206_v58 = vld [vmem:[%s5016_s2 + $0x178] sm:$0xff] }
 0x217   :  { %2376 = vst.msk [vmem:[%s5016_s2 + $0x118] sm:$0xff] %vm30_vm0, %v2883_v61  ;;  %v1866_v0 = vadd.f32 %v1734_v59, %v200_v47 }
 0x218   :  { %v1996_v1 = vld [vmem:[%s5016_s2 + $0x138] sm:$0xff]  ;;  %2892 = vrsqrt.f32 %v2059_v63  ;;  %v1738_v3 = vpop.f32.mrb[84].mxu1 }
 0x219   :  { %v2060_v2 = vmax.f32 %v1996_v1, 1.0  ;;  %1931 = vst.msk [vmem:[%s5016_s2 + $0x148] sm:$0xff] %vm30_vm0, %v1866_v0  ;;  %2894 = vrcp.f32 %v2059_v63  ;;  %v1449_v4 = vpop.f32.mrb[84].mxu0  ;;  %v1740_v6 = vpop.f32.mrb[85].mxu1 }
 0x21a   :  { %v2885_v7 = vpop.eup %2884  ;;  %v1739_v8 = vadd.f32 %v1738_v3, %v1449_v4  ;;  %v1451_v9 = vpop.f32.mrb[85].mxu0 }
 0x21b   :  { %2896 = vrsqrt.f32 %v2060_v2  ;;  %v1741_v10 = vpop.f32.mrb[86].mxu1  ;;  %v2887_v11 = vpop.eup %2886  ;;  %2185 = vst.msk [vmem:[%s5015_s1 + $0x120] sm:$0xff] %vm30_vm0, %v2885_v7  ;;  %v207_v7 = vld [vmem:[%s5016_s2 + $0x180] sm:$0xff] }
 0x21c   :  { %2898 = vrcp.f32 %v2060_v2  ;;  %v1452_v12 = vpop.f32.mrb[86].mxu0  ;;  %v1743_v14 = vpop.f32.mrb[87].mxu1  ;;  %2377 = vst.msk [vmem:[%s5016_s2 + $0x120] sm:$0xff] %vm30_vm0, %v2887_v11  ;;  %v1867_v15 = vadd.f32 %v1739_v8, %v201_v5 }
 0x21d   :  { %v2889_v49 = vpop.eup %2888  ;;  %v1742_v16 = vadd.f32 %v1741_v10, %v1452_v12  ;;  %v1454_v50 = vpop.f32.mrb[87].mxu0  ;;  %v1997_v18 = vld [vmem:[%s5016_s2 + $0x140] sm:$0xff] }
 0x21e   :  { %v2891_v17 = vpop.eup %2890  ;;  %2186 = vst.msk [vmem:[%s5015_s1 + $0x128] sm:$0xff] %vm30_vm0, %v2889_v49  ;;  %v2061_v19 = vmax.f32 %v1997_v18, 1.0  ;;  %1932 = vst.msk [vmem:[%s5016_s2 + $0x150] sm:$0xff] %vm30_vm0, %v1867_v15  ;;  %v208_v49 = vld [vmem:[%s5016_s2 + $0x188] sm:$0xff] }
 0x21f   :  { %2378 = vst.msk [vmem:[%s5016_s2 + $0x128] sm:$0xff] %vm30_vm0, %v2891_v17  ;;  %v1868_v22 = vadd.f32 %v1742_v16, %v202_v13 }
 0x220   :  { %v1998_v20 = vld [vmem:[%s5016_s2 + $0x148] sm:$0xff]  ;;  %2900 = vrsqrt.f32 %v2061_v19  ;;  %v1746_v23 = vpop.f32.mrb[88].mxu1 }
 0x221   :  { %v2062_v21 = vmax.f32 %v1998_v20, 1.0  ;;  %1933 = vst.msk [vmem:[%s5016_s2 + $0x158] sm:$0xff] %vm30_vm0, %v1868_v22  ;;  %2902 = vrcp.f32 %v2061_v19  ;;  %v1457_v24 = vpop.f32.mrb[88].mxu0  ;;  %v1748_v26 = vpop.f32.mrb[89].mxu1 }
 0x222   :  { %v2893_v27 = vpop.eup %2892  ;;  %v1747_v28 = vadd.f32 %v1746_v23, %v1457_v24  ;;  %v1459_v29 = vpop.f32.mrb[89].mxu0 }
 0x223   :  { %2904 = vrsqrt.f32 %v2062_v21  ;;  %v1749_v30 = vpop.f32.mrb[90].mxu1  ;;  %v2895_v31 = vpop.eup %2894  ;;  %2187 = vst.msk [vmem:[%s5015_s1 + $0x130] sm:$0xff] %vm30_vm0, %v2893_v27  ;;  %v209_v27 = vld [vmem:[%s5016_s2 + $0x190] sm:$0xff] }
 0x224   :  { %2906 = vrcp.f32 %v2062_v21  ;;  %v1460_v32 = vpop.f32.mrb[90].mxu0  ;;  %v1751_v34 = vpop.f32.mrb[91].mxu1  ;;  %2379 = vst.msk [vmem:[%s5016_s2 + $0x130] sm:$0xff] %vm30_vm0, %v2895_v31  ;;  %v1869_v36 = vadd.f32 %v1747_v28, %v203_v25 }
 0x225   :  { %v2897_v35 = vpop.eup %2896  ;;  %v1750_v37 = vadd.f32 %v1749_v30, %v1460_v32  ;;  %v1462_v38 = vpop.f32.mrb[91].mxu0  ;;  %v1999_v40 = vld [vmem:[%s5016_s2 + $0x150] sm:$0xff] }
 0x226   :  { %v2899_v39 = vpop.eup %2898  ;;  %2188 = vst.msk [vmem:[%s5015_s1 + $0x138] sm:$0xff] %vm30_vm0, %v2897_v35  ;;  %v2063_v41 = vmax.f32 %v1999_v40, 1.0  ;;  %1934 = vst.msk [vmem:[%s5016_s2 + $0x160] sm:$0xff] %vm30_vm0, %v1869_v36  ;;  %v210_v35 = vld [vmem:[%s5016_s2 + $0x198] sm:$0xff] }
 0x227   :  { %2380 = vst.msk [vmem:[%s5016_s2 + $0x138] sm:$0xff] %vm30_vm0, %v2899_v39  ;;  %v1870_v42 = vadd.f32 %v1750_v37, %v204_v33 }
 0x228   :  { %v2000_v43 = vld [vmem:[%s5016_s2 + $0x158] sm:$0xff]  ;;  %2908 = vrsqrt.f32 %v2063_v41  ;;  %v1754_v45 = vpop.f32.mrb[92].mxu1 }
 0x229   :  { %v2064_v44 = vmax.f32 %v2000_v43, 1.0  ;;  %1935 = vst.msk [vmem:[%s5016_s2 + $0x168] sm:$0xff] %vm30_vm0, %v1870_v42  ;;  %2910 = vrcp.f32 %v2063_v41  ;;  %v1465_v46 = vpop.f32.mrb[92].mxu0  ;;  %v1756_v52 = vpop.f32.mrb[93].mxu1 }
 0x22a   :  { %v2901_v53 = vpop.eup %2900  ;;  %v1755_v54 = vadd.f32 %v1754_v45, %v1465_v46  ;;  %v1467_v55 = vpop.f32.mrb[93].mxu0 }
 0x22b   :  { %2912 = vrsqrt.f32 %v2064_v44  ;;  %v1757_v56 = vpop.f32.mrb[94].mxu1  ;;  %v2903_v47 = vpop.eup %2902  ;;  %2189 = vst.msk [vmem:[%s5015_s1 + $0x140] sm:$0xff] %vm30_vm0, %v2901_v53  ;;  %v211_v53 = vld [vmem:[%s5016_s2 + $0x1a0] sm:$0xff] }
 0x22c   :  { %2914 = vrcp.f32 %v2064_v44  ;;  %v1468_v57 = vpop.f32.mrb[94].mxu0  ;;  %v1759_v48 = vpop.f32.mrb[95].mxu1  ;;  %2381 = vst.msk [vmem:[%s5016_s2 + $0x140] sm:$0xff] %vm30_vm0, %v2903_v47  ;;  %v1871_v60 = vadd.f32 %v1755_v54, %v205_v51 }
 0x22d   :  { %v2905_v59 = vpop.eup %2904  ;;  %v1758_v61 = vadd.f32 %v1757_v56, %v1468_v57  ;;  %v1470_v62 = vpop.f32.mrb[95].mxu0  ;;  %v2001_v0 = vld [vmem:[%s5016_s2 + $0x160] sm:$0xff] }
 0x22e   :  { %v2907_v63 = vpop.eup %2906  ;;  %2190 = vst.msk [vmem:[%s5015_s1 + $0x148] sm:$0xff] %vm30_vm0, %v2905_v59  ;;  %v2065_v1 = vmax.f32 %v2001_v0, 1.0  ;;  %1936 = vst.msk [vmem:[%s5016_s2 + $0x170] sm:$0xff] %vm30_vm0, %v1871_v60  ;;  %v212_v59 = vld [vmem:[%s5016_s2 + $0x1a8] sm:$0xff] }
 0x22f   :  { %2382 = vst.msk [vmem:[%s5016_s2 + $0x148] sm:$0xff] %vm30_vm0, %v2907_v63  ;;  %v1872_v2 = vadd.f32 %v1758_v61, %v206_v58 }
 0x230   :  { %v2002_v3 = vld [vmem:[%s5016_s2 + $0x168] sm:$0xff]  ;;  %2916 = vrsqrt.f32 %v2065_v1  ;;  %v1762_v5 = vpop.f32.mrb[96].mxu1 }
 0x231   :  { %v2066_v4 = vmax.f32 %v2002_v3, 1.0  ;;  %1937 = vst.msk [vmem:[%s5016_s2 + $0x178] sm:$0xff] %vm30_vm0, %v1872_v2  ;;  %2918 = vrcp.f32 %v2065_v1  ;;  %v1473_v6 = vpop.f32.mrb[96].mxu0  ;;  %v1764_v8 = vpop.f32.mrb[97].mxu1 }
 0x232   :  { %v2909_v9 = vpop.eup %2908  ;;  %v1763_v10 = vadd.f32 %v1762_v5, %v1473_v6  ;;  %v1475_v11 = vpop.f32.mrb[97].mxu0 }
 0x233   :  { %2920 = vrsqrt.f32 %v2066_v4  ;;  %v1765_v12 = vpop.f32.mrb[98].mxu1  ;;  %v2911_v13 = vpop.eup %2910  ;;  %2191 = vst.msk [vmem:[%s5015_s1 + $0x150] sm:$0xff] %vm30_vm0, %v2909_v9  ;;  %v213_v9 = vld [vmem:[%s5016_s2 + $0x1b0] sm:$0xff] }
 0x234   :  { %2922 = vrcp.f32 %v2066_v4  ;;  %v1476_v14 = vpop.f32.mrb[98].mxu0  ;;  %v1767_v15 = vpop.f32.mrb[99].mxu1  ;;  %2383 = vst.msk [vmem:[%s5016_s2 + $0x150] sm:$0xff] %vm30_vm0, %v2911_v13  ;;  %v1873_v50 = vadd.f32 %v1763_v10, %v207_v7 }
 0x235   :  { %v2913_v16 = vpop.eup %2912  ;;  %v1766_v17 = vadd.f32 %v1765_v12, %v1476_v14  ;;  %v1478_v18 = vpop.f32.mrb[99].mxu0  ;;  %v2003_v22 = vld [vmem:[%s5016_s2 + $0x170] sm:$0xff] }
 0x236   :  { %v2915_v19 = vpop.eup %2914  ;;  %2192 = vst.msk [vmem:[%s5015_s1 + $0x158] sm:$0xff] %vm30_vm0, %v2913_v16  ;;  %v2067_v20 = vmax.f32 %v2003_v22, 1.0  ;;  %1938 = vst.msk [vmem:[%s5016_s2 + $0x180] sm:$0xff] %vm30_vm0, %v1873_v50  ;;  %v214_v16 = vld [vmem:[%s5016_s2 + $0x1b8] sm:$0xff] }
 0x237   :  { %2384 = vst.msk [vmem:[%s5016_s2 + $0x158] sm:$0xff] %vm30_vm0, %v2915_v19  ;;  %v1874_v21 = vadd.f32 %v1766_v17, %v208_v49 }
 0x238   :  { %v2004_v23 = vld [vmem:[%s5016_s2 + $0x178] sm:$0xff]  ;;  %2924 = vrsqrt.f32 %v2067_v20  ;;  %v1770_v25 = vpop.f32.mrb[100].mxu1 }
 0x239   :  { %v2068_v24 = vmax.f32 %v2004_v23, 1.0  ;;  %1939 = vst.msk [vmem:[%s5016_s2 + $0x188] sm:$0xff] %vm30_vm0, %v1874_v21  ;;  %2926 = vrcp.f32 %v2067_v20  ;;  %v1481_v26 = vpop.f32.mrb[100].mxu0  ;;  %v1772_v28 = vpop.f32.mrb[101].mxu1 }
 0x23a   :  { %v2917_v29 = vpop.eup %2916  ;;  %v1771_v30 = vadd.f32 %v1770_v25, %v1481_v26  ;;  %v1483_v31 = vpop.f32.mrb[101].mxu0 }
 0x23b   :  { %2928 = vrsqrt.f32 %v2068_v24  ;;  %v1773_v32 = vpop.f32.mrb[102].mxu1  ;;  %v2919_v33 = vpop.eup %2918  ;;  %2193 = vst.msk [vmem:[%s5015_s1 + $0x160] sm:$0xff] %vm30_vm0, %v2917_v29  ;;  %v215_v29 = vld [vmem:[%s5016_s2 + $0x1c0] sm:$0xff] }
 0x23c   :  { %2930 = vrcp.f32 %v2068_v24  ;;  %v1484_v34 = vpop.f32.mrb[102].mxu0  ;;  %v1775_v36 = vpop.f32.mrb[103].mxu1  ;;  %2385 = vst.msk [vmem:[%s5016_s2 + $0x160] sm:$0xff] %vm30_vm0, %v2919_v33  ;;  %v1875_v38 = vadd.f32 %v1771_v30, %v209_v27 }
 0x23d   :  { %v2921_v37 = vpop.eup %2920  ;;  %v1774_v39 = vadd.f32 %v1773_v32, %v1484_v34  ;;  %v1486_v40 = vpop.f32.mrb[103].mxu0  ;;  %v2005_v42 = vld [vmem:[%s5016_s2 + $0x180] sm:$0xff] }
 0x23e   :  { %v2923_v41 = vpop.eup %2922  ;;  %2194 = vst.msk [vmem:[%s5015_s1 + $0x168] sm:$0xff] %vm30_vm0, %v2921_v37  ;;  %v2069_v43 = vmax.f32 %v2005_v42, 1.0  ;;  %1940 = vst.msk [vmem:[%s5016_s2 + $0x190] sm:$0xff] %vm30_vm0, %v1875_v38  ;;  %v216_v37 = vld [vmem:[%s5016_s2 + $0x1c8] sm:$0xff] }
 0x23f   :  { %2386 = vst.msk [vmem:[%s5016_s2 + $0x168] sm:$0xff] %vm30_vm0, %v2923_v41  ;;  %v1876_v44 = vadd.f32 %v1774_v39, %v210_v35 }
 0x240   :  { %v2006_v45 = vld [vmem:[%s5016_s2 + $0x188] sm:$0xff]  ;;  %2932 = vrsqrt.f32 %v2069_v43  ;;  %v1778_v51 = vpop.f32.mrb[104].mxu1 }
 0x241   :  { %v2070_v46 = vmax.f32 %v2006_v45, 1.0  ;;  %1941 = vst.msk [vmem:[%s5016_s2 + $0x198] sm:$0xff] %vm30_vm0, %v1876_v44  ;;  %2934 = vrcp.f32 %v2069_v43  ;;  %v1489_v52 = vpop.f32.mrb[104].mxu0  ;;  %v1780_v54 = vpop.f32.mrb[105].mxu1 }
 0x242   :  { %v2925_v55 = vpop.eup %2924  ;;  %v1779_v56 = vadd.f32 %v1778_v51, %v1489_v52  ;;  %v1491_v47 = vpop.f32.mrb[105].mxu0 }
 0x243   :  { %2936 = vrsqrt.f32 %v2070_v46  ;;  %v1781_v57 = vpop.f32.mrb[106].mxu1  ;;  %v2927_v58 = vpop.eup %2926  ;;  %2195 = vst.msk [vmem:[%s5015_s1 + $0x170] sm:$0xff] %vm30_vm0, %v2925_v55  ;;  %v217_v55 = vld [vmem:[%s5016_s2 + $0x1d0] sm:$0xff] }
 0x244   :  { %2938 = vrcp.f32 %v2070_v46  ;;  %v1492_v48 = vpop.f32.mrb[106].mxu0  ;;  %v1783_v60 = vpop.f32.mrb[107].mxu1  ;;  %2387 = vst.msk [vmem:[%s5016_s2 + $0x170] sm:$0xff] %vm30_vm0, %v2927_v58  ;;  %v1877_v62 = vadd.f32 %v1779_v56, %v211_v53 }
 0x245   :  { %v2929_v61 = vpop.eup %2928  ;;  %v1782_v63 = vadd.f32 %v1781_v57, %v1492_v48  ;;  %v1494_v0 = vpop.f32.mrb[107].mxu0  ;;  %v2007_v2 = vld [vmem:[%s5016_s2 + $0x190] sm:$0xff] }
 0x246   :  { %v2931_v1 = vpop.eup %2930  ;;  %2196 = vst.msk [vmem:[%s5015_s1 + $0x178] sm:$0xff] %vm30_vm0, %v2929_v61  ;;  %v2071_v3 = vmax.f32 %v2007_v2, 1.0  ;;  %1942 = vst.msk [vmem:[%s5016_s2 + $0x1a0] sm:$0xff] %vm30_vm0, %v1877_v62  ;;  %v218_v61 = vld [vmem:[%s5016_s2 + $0x1d8] sm:$0xff] }
 0x247   :  { %2388 = vst.msk [vmem:[%s5016_s2 + $0x178] sm:$0xff] %vm30_vm0, %v2931_v1  ;;  %v1878_v4 = vadd.f32 %v1782_v63, %v212_v59 }
 0x248   :  { %v2008_v5 = vld [vmem:[%s5016_s2 + $0x198] sm:$0xff]  ;;  %2940 = vrsqrt.f32 %v2071_v3  ;;  %v1786_v7 = vpop.f32.mrb[108].mxu1 }
 0x249   :  { %v2072_v6 = vmax.f32 %v2008_v5, 1.0  ;;  %1943 = vst.msk [vmem:[%s5016_s2 + $0x1a8] sm:$0xff] %vm30_vm0, %v1878_v4  ;;  %2942 = vrcp.f32 %v2071_v3  ;;  %v1497_v8 = vpop.f32.mrb[108].mxu0  ;;  %v1788_v10 = vpop.f32.mrb[109].mxu1 }
 0x24a   :  { %v2933_v11 = vpop.eup %2932  ;;  %v1787_v12 = vadd.f32 %v1786_v7, %v1497_v8  ;;  %v1499_v13 = vpop.f32.mrb[109].mxu0 }
 0x24b   :  { %2944 = vrsqrt.f32 %v2072_v6  ;;  %v1789_v14 = vpop.f32.mrb[110].mxu1  ;;  %v2935_v49 = vpop.eup %2934  ;;  %2197 = vst.msk [vmem:[%s5015_s1 + $0x180] sm:$0xff] %vm30_vm0, %v2933_v11  ;;  %v219_v11 = vld [vmem:[%s5016_s2 + $0x1e0] sm:$0xff] }
 0x24c   :  { %2946 = vrcp.f32 %v2072_v6  ;;  %v1500_v15 = vpop.f32.mrb[110].mxu0  ;;  %v1791_v50 = vpop.f32.mrb[111].mxu1  ;;  %2389 = vst.msk [vmem:[%s5016_s2 + $0x180] sm:$0xff] %vm30_vm0, %v2935_v49  ;;  %v1879_v18 = vadd.f32 %v1787_v12, %v213_v9 }
 0x24d   :  { %v2937_v17 = vpop.eup %2936  ;;  %v1790_v19 = vadd.f32 %v1789_v14, %v1500_v15  ;;  %v1502_v22 = vpop.f32.mrb[111].mxu0  ;;  %v2009_v21 = vld [vmem:[%s5016_s2 + $0x1a0] sm:$0xff] }
 0x24e   :  { %v2939_v20 = vpop.eup %2938  ;;  %2198 = vst.msk [vmem:[%s5015_s1 + $0x188] sm:$0xff] %vm30_vm0, %v2937_v17  ;;  %v2073_v23 = vmax.f32 %v2009_v21, 1.0  ;;  %1944 = vst.msk [vmem:[%s5016_s2 + $0x1b0] sm:$0xff] %vm30_vm0, %v1879_v18  ;;  %v220_v17 = vld [vmem:[%s5016_s2 + $0x1e8] sm:$0xff] }
 0x24f   :  { %2390 = vst.msk [vmem:[%s5016_s2 + $0x188] sm:$0xff] %vm30_vm0, %v2939_v20  ;;  %v1880_v24 = vadd.f32 %v1790_v19, %v214_v16 }
 0x250   :  { %v2010_v25 = vld [vmem:[%s5016_s2 + $0x1a8] sm:$0xff]  ;;  %2948 = vrsqrt.f32 %v2073_v23  ;;  %v1794_v27 = vpop.f32.mrb[112].mxu1 }
 0x251   :  { %v2074_v26 = vmax.f32 %v2010_v25, 1.0  ;;  %1945 = vst.msk [vmem:[%s5016_s2 + $0x1b8] sm:$0xff] %vm30_vm0, %v1880_v24  ;;  %2950 = vrcp.f32 %v2073_v23  ;;  %v1505_v28 = vpop.f32.mrb[112].mxu0  ;;  %v1796_v30 = vpop.f32.mrb[113].mxu1 }
 0x252   :  { %v2941_v31 = vpop.eup %2940  ;;  %v1795_v32 = vadd.f32 %v1794_v27, %v1505_v28  ;;  %v1507_v33 = vpop.f32.mrb[113].mxu0 }
 0x253   :  { %2952 = vrsqrt.f32 %v2074_v26  ;;  %v1797_v34 = vpop.f32.mrb[114].mxu1  ;;  %v2943_v35 = vpop.eup %2942  ;;  %2199 = vst.msk [vmem:[%s5015_s1 + $0x190] sm:$0xff] %vm30_vm0, %v2941_v31  ;;  %v221_v31 = vld [vmem:[%s5016_s2 + $0x1f0] sm:$0xff] }
 0x254   :  { %2954 = vrcp.f32 %v2074_v26  ;;  %v1508_v36 = vpop.f32.mrb[114].mxu0  ;;  %v1799_v38 = vpop.f32.mrb[115].mxu1  ;;  %2391 = vst.msk [vmem:[%s5016_s2 + $0x190] sm:$0xff] %vm30_vm0, %v2943_v35  ;;  %v1881_v40 = vadd.f32 %v1795_v32, %v215_v29 }
 0x255   :  { %v2945_v39 = vpop.eup %2944  ;;  %v1798_v41 = vadd.f32 %v1797_v34, %v1508_v36  ;;  %v1510_v42 = vpop.f32.mrb[115].mxu0  ;;  %v2011_v44 = vld [vmem:[%s5016_s2 + $0x1b0] sm:$0xff] }
 0x256   :  { %v2947_v43 = vpop.eup %2946  ;;  %2200 = vst.msk [vmem:[%s5015_s1 + $0x198] sm:$0xff] %vm30_vm0, %v2945_v39  ;;  %v2075_v45 = vmax.f32 %v2011_v44, 1.0  ;;  %1946 = vst.msk [vmem:[%s5016_s2 + $0x1c0] sm:$0xff] %vm30_vm0, %v1881_v40  ;;  %v222_v39 = vld [vmem:[%s5016_s2 + $0x1f8] sm:$0xff] }
 0x257   :  { %2392 = vst.msk [vmem:[%s5016_s2 + $0x198] sm:$0xff] %vm30_vm0, %v2947_v43  ;;  %v1882_v46 = vadd.f32 %v1798_v41, %v216_v37 }
 0x258   :  { %v2012_v51 = vld [vmem:[%s5016_s2 + $0x1b8] sm:$0xff]  ;;  %2956 = vrsqrt.f32 %v2075_v45  ;;  %v1802_v53 = vpop.f32.mrb[116].mxu1 }
 0x259   :  { %v2076_v52 = vmax.f32 %v2012_v51, 1.0  ;;  %1947 = vst.msk [vmem:[%s5016_s2 + $0x1c8] sm:$0xff] %vm30_vm0, %v1882_v46  ;;  %2958 = vrcp.f32 %v2075_v45  ;;  %v1513_v54 = vpop.f32.mrb[116].mxu0  ;;  %v1804_v56 = vpop.f32.mrb[117].mxu1 }
 0x25a   :  { %v2949_v47 = vpop.eup %2948  ;;  %v1803_v57 = vadd.f32 %v1802_v53, %v1513_v54  ;;  %v1515_v58 = vpop.f32.mrb[117].mxu0 }
 0x25b   :  { %2960 = vrsqrt.f32 %v2076_v52  ;;  %v1805_v48 = vpop.f32.mrb[118].mxu1  ;;  %v2951_v59 = vpop.eup %2950  ;;  %2201 = vst.msk [vmem:[%s5015_s1 + $0x1a0] sm:$0xff] %vm30_vm0, %v2949_v47 }
 0x25c   :  { %2962 = vrcp.f32 %v2076_v52  ;;  %v1516_v60 = vpop.f32.mrb[118].mxu0  ;;  %v1807_v62 = vpop.f32.mrb[119].mxu1  ;;  %2393 = vst.msk [vmem:[%s5016_s2 + $0x1a0] sm:$0xff] %vm30_vm0, %v2951_v59  ;;  %v1883_v0 = vadd.f32 %v1803_v57, %v217_v55 }
 0x25d   :  { %v2953_v63 = vpop.eup %2952  ;;  %v1806_v1 = vadd.f32 %v1805_v48, %v1516_v60  ;;  %v1518_v2 = vpop.f32.mrb[119].mxu0  ;;  %v2013_v4 = vld [vmem:[%s5016_s2 + $0x1c0] sm:$0xff] }
 0x25e   :  { %v2955_v3 = vpop.eup %2954  ;;  %2202 = vst.msk [vmem:[%s5015_s1 + $0x1a8] sm:$0xff] %vm30_vm0, %v2953_v63  ;;  %v2077_v5 = vmax.f32 %v2013_v4, 1.0  ;;  %1948 = vst.msk [vmem:[%s5016_s2 + $0x1d0] sm:$0xff] %vm30_vm0, %v1883_v0 }
 0x25f   :  { %2394 = vst.msk [vmem:[%s5016_s2 + $0x1a8] sm:$0xff] %vm30_vm0, %v2955_v3  ;;  %v1884_v6 = vadd.f32 %v1806_v1, %v218_v61 }
 0x260   :  { %v2014_v7 = vld [vmem:[%s5016_s2 + $0x1c8] sm:$0xff]  ;;  %2964 = vrsqrt.f32 %v2077_v5  ;;  %v1810_v9 = vpop.f32.mrb[120].mxu1 }
 0x261   :  { %v2078_v8 = vmax.f32 %v2014_v7, 1.0  ;;  %1949 = vst.msk [vmem:[%s5016_s2 + $0x1d8] sm:$0xff] %vm30_vm0, %v1884_v6  ;;  %2966 = vrcp.f32 %v2077_v5  ;;  %v1521_v10 = vpop.f32.mrb[120].mxu0  ;;  %v1812_v12 = vpop.f32.mrb[121].mxu1 }
 0x262   :  { %v2957_v13 = vpop.eup %2956  ;;  %v1811_v14 = vadd.f32 %v1810_v9, %v1521_v10  ;;  %v1523_v49 = vpop.f32.mrb[121].mxu0 }
 0x263   :  { %2968 = vrsqrt.f32 %v2078_v8  ;;  %v1813_v15 = vpop.f32.mrb[122].mxu1  ;;  %v2959_v16 = vpop.eup %2958  ;;  %2203 = vst.msk [vmem:[%s5015_s1 + $0x1b0] sm:$0xff] %vm30_vm0, %v2957_v13 }
 0x264   :  { %2970 = vrcp.f32 %v2078_v8  ;;  %v1524_v50 = vpop.f32.mrb[122].mxu0  ;;  %v1815_v18 = vpop.f32.mrb[123].mxu1  ;;  %2395 = vst.msk [vmem:[%s5016_s2 + $0x1b0] sm:$0xff] %vm30_vm0, %v2959_v16  ;;  %v1885_v22 = vadd.f32 %v1811_v14, %v219_v11 }
 0x265   :  { %v2961_v19 = vpop.eup %2960  ;;  %v1814_v20 = vadd.f32 %v1813_v15, %v1524_v50  ;;  %v1526_v21 = vpop.f32.mrb[123].mxu0  ;;  %v2015_v24 = vld [vmem:[%s5016_s2 + $0x1d0] sm:$0xff] }
 0x266   :  { %v2963_v23 = vpop.eup %2962  ;;  %2204 = vst.msk [vmem:[%s5015_s1 + $0x1b8] sm:$0xff] %vm30_vm0, %v2961_v19  ;;  %v2079_v25 = vmax.f32 %v2015_v24, 1.0  ;;  %1950 = vst.msk [vmem:[%s5016_s2 + $0x1e0] sm:$0xff] %vm30_vm0, %v1885_v22 }
 0x267   :  { %2396 = vst.msk [vmem:[%s5016_s2 + $0x1b8] sm:$0xff] %vm30_vm0, %v2963_v23  ;;  %v1886_v26 = vadd.f32 %v1814_v20, %v220_v17 }
 0x268   :  { %v2016_v27 = vld [vmem:[%s5016_s2 + $0x1d8] sm:$0xff]  ;;  %2972 = vrsqrt.f32 %v2079_v25  ;;  %v1818_v29 = vpop.f32.mrb[124].mxu1 }
 0x269   :  { %v2080_v28 = vmax.f32 %v2016_v27, 1.0  ;;  %1951 = vst.msk [vmem:[%s5016_s2 + $0x1e8] sm:$0xff] %vm30_vm0, %v1886_v26  ;;  %2974 = vrcp.f32 %v2079_v25  ;;  %v1529_v30 = vpop.f32.mrb[124].mxu0  ;;  %v1820_v32 = vpop.f32.mrb[125].mxu1 }
 0x26a   :  { %v2965_v33 = vpop.eup %2964  ;;  %v1819_v34 = vadd.f32 %v1818_v29, %v1529_v30  ;;  %v1531_v35 = vpop.f32.mrb[125].mxu0 }
 0x26b   :  { %2976 = vrsqrt.f32 %v2080_v28  ;;  %v1821_v36 = vpop.f32.mrb[126].mxu1  ;;  %v2967_v37 = vpop.eup %2966  ;;  %2205 = vst.msk [vmem:[%s5015_s1 + $0x1c0] sm:$0xff] %vm30_vm0, %v2965_v33 }
 0x26c   :  { %2978 = vrcp.f32 %v2080_v28  ;;  %v1532_v38 = vpop.f32.mrb[126].mxu0  ;;  %v1823_v40 = vpop.f32.mrb[127].mxu1  ;;  %2397 = vst.msk [vmem:[%s5016_s2 + $0x1c0] sm:$0xff] %vm30_vm0, %v2967_v37  ;;  %v1887_v42 = vadd.f32 %v1819_v34, %v221_v31 }
 0x26d   :  { %v2969_v41 = vpop.eup %2968  ;;  %v1822_v43 = vadd.f32 %v1821_v36, %v1532_v38  ;;  %v1534_v44 = vpop.f32.mrb[127].mxu0  ;;  %v2017_v46 = vld [vmem:[%s5016_s2 + $0x1e0] sm:$0xff] }
 0x26e   :  { %v2971_v45 = vpop.eup %2970  ;;  %2206 = vst.msk [vmem:[%s5015_s1 + $0x1c8] sm:$0xff] %vm30_vm0, %v2969_v41  ;;  %v2081_v51 = vmax.f32 %v2017_v46, 1.0  ;;  %1952 = vst.msk [vmem:[%s5016_s2 + $0x1f0] sm:$0xff] %vm30_vm0, %v1887_v42 }
 0x26f   :  { %2398 = vst.msk [vmem:[%s5016_s2 + $0x1c8] sm:$0xff] %vm30_vm0, %v2971_v45  ;;  %v1888_v52 = vadd.f32 %v1822_v43, %v222_v39 }
 0x270   :  { %v2018_v53 = vld [vmem:[%s5016_s2 + $0x1e8] sm:$0xff]  ;;  %2980 = vrsqrt.f32 %v2081_v51 }
 0x271   :  { %v2082_v54 = vmax.f32 %v2018_v53, 1.0  ;;  %1953 = vst.msk [vmem:[%s5016_s2 + $0x1f8] sm:$0xff] %vm30_vm0, %v1888_v52  ;;  %2982 = vrcp.f32 %v2081_v51 }
 0x272   :  { %v2973_v55 = vpop.eup %2972 }
 0x273   :  { %2984 = vrsqrt.f32 %v2082_v54  ;;  %v2975_v56 = vpop.eup %2974  ;;  %2207 = vst.msk [vmem:[%s5015_s1 + $0x1d0] sm:$0xff] %vm30_vm0, %v2973_v55 }
 0x274   :  { %2986 = vrcp.f32 %v2082_v54  ;;  %2399 = vst.msk [vmem:[%s5016_s2 + $0x1d0] sm:$0xff] %vm30_vm0, %v2975_v56 }
 0x275   :  { %v2977_v47 = vpop.eup %2976  ;;  %v2019_v58 = vld [vmem:[%s5016_s2 + $0x1f0] sm:$0xff] }
 0x276   :  { %v2979_v57 = vpop.eup %2978  ;;  %2208 = vst.msk [vmem:[%s5015_s1 + $0x1d8] sm:$0xff] %vm30_vm0, %v2977_v47  ;;  %v2083_v48 = vmax.f32 %v2019_v58, 1.0 }
 0x277   :  { %2400 = vst.msk [vmem:[%s5016_s2 + $0x1d8] sm:$0xff] %vm30_vm0, %v2979_v57 }
 0x278   :  { %v2020_v59 = vld [vmem:[%s5016_s2 + $0x1f8] sm:$0xff]  ;;  %2988 = vrsqrt.f32 %v2083_v48 }
 0x279   :  { %v2084_v60 = vmax.f32 %v2020_v59, 1.0  ;;  %2990 = vrcp.f32 %v2083_v48 }
 0x27a   :  { %v2981_v61 = vpop.eup %2980 }
 0x27b   :  { %2992 = vrsqrt.f32 %v2084_v60  ;;  %v2983_v62 = vpop.eup %2982  ;;  %2209 = vst.msk [vmem:[%s5015_s1 + $0x1e0] sm:$0xff] %vm30_vm0, %v2981_v61 }
 0x27c   :  { %2994 = vrcp.f32 %v2084_v60  ;;  %2401 = vst.msk [vmem:[%s5016_s2 + $0x1e0] sm:$0xff] %vm30_vm0, %v2983_v62 }
 0x27d   :  { %v2985_v63 = vpop.eup %2984 }
 0x27e   :  { %v2987_v0 = vpop.eup %2986  ;;  %2210 = vst.msk [vmem:[%s5015_s1 + $0x1e8] sm:$0xff] %vm30_vm0, %v2985_v63 }
 0x27f   :  { %2402 = vst.msk [vmem:[%s5016_s2 + $0x1e8] sm:$0xff] %vm30_vm0, %v2987_v0 }
 0x282   :  { %v2989_v1 = vpop.eup %2988 }
 0x283   :  { %v2991_v2 = vpop.eup %2990  ;;  %2211 = vst.msk [vmem:[%s5015_s1 + $0x1f0] sm:$0xff] %vm30_vm0, %v2989_v1 }
 0x284   :  { %2403 = vst.msk [vmem:[%s5016_s2 + $0x1f0] sm:$0xff] %vm30_vm0, %v2991_v2 }
 0x285   :  { %v2993_v3 = vpop.eup %2992 }
 0x286   :  { %v2995_v4 = vpop.eup %2994  ;;  %2212 = vst.msk [vmem:[%s5015_s1 + $0x1f8] sm:$0xff] %vm30_vm0, %v2993_v3 }
 0x287   :  { %2404 = vst.msk [vmem:[%s5016_s2 + $0x1f8] sm:$0xff] %vm30_vm0, %v2995_v4 }
 0x288   :  { %2413 = vsyncpa [#allocation3], 1 }

</bundles_post_ra>
